<compile_context>
chip_gen: v6e
topology: v6e:2x2x1
jax: 0.10.0
libtpu: 0.0.40
codegen_flags: <defaults>
</compile_context>

<pallas_src>
import functools

import jax
import jax.numpy as jnp
from jax.experimental import pallas as pl
from jax.experimental.pallas import tpu as pltpu


def _round_up(x, m):
    return (x + m - 1) // m * m


def _pick_batch_tile(B, batch_block):
    """Pick the batch tile bb (multiple of 16) and padded batch B_pad.

    Prefers >= 2 (and even) grid steps when the batch is large enough so v7x's two
    TensorCores are both busy; otherwise uses the largest tile that covers the batch.
    """
    target = min(batch_block, _round_up(B, 16))
    if B > target:
        bb = target
    elif B >= 32:
        bb = _round_up(-(-B // 2), 16)      # split in two for v7x megacore
    else:
        bb = _round_up(max(B, 1), 16)
    n = -(-B // bb)
    if n > 1 and n % 2 == 1:
        # rebalance an odd tile count across v7x's 2 TensorCores
        n += 1
        bb = _round_up(-(-B // n), 16)
    B_pad = _round_up(B, bb)
    return bb, B_pad


def _autoencoder_kernel(
    x_ref,
    w1_ref, b1_ref,
    w2_ref, b2_ref,
    wz_ref, bz_ref,       # fused bottleneck: [w3_pad | w3@w4], [b3_pad | b3@w4+b4]
    w5_ref, b5_ref,
    w6_ref, b6_ref,
    dec_ref, enc_ref,
    *, dlat_p,
):
    """Fused whole-forward kernel: 5 bf16 MXU matmuls, f32 accumulation, VPU/EUP activations."""
    x = x_ref[...].astype(jnp.bfloat16)                                   # (bb, input_dim)

    # ---- encoder (layers 1-2) ----
    h = jnp.dot(x, w1_ref[...], preferred_element_type=jnp.float32) + b1_ref[...]
    h = jnp.maximum(h, 0.0).astype(jnp.bfloat16)                          # ReLU
    h = jnp.dot(h, w2_ref[...], preferred_element_type=jnp.float32) + b2_ref[...]
    h = jnp.maximum(h, 0.0).astype(jnp.bfloat16)                          # ReLU

    # ---- fused bottleneck: one matmul produces enc (cols :dlat_p) and decoder pre-act ----
    y = jnp.dot(h, wz_ref[...], preferred_element_type=jnp.float32) + bz_ref[...]
    enc_ref[...] = y[:, :dlat_p].astype(enc_ref.dtype)
    d = jnp.maximum(y[:, dlat_p:], 0.0).astype(jnp.bfloat16)              # ReLU (decoder L4)

    # ---- decoder (layers 5-6) ----
    d = jnp.dot(d, w5_ref[...], preferred_element_type=jnp.float32) + b5_ref[...]
    d = jnp.maximum(d, 0.0).astype(jnp.bfloat16)                          # ReLU
    logits = jnp.dot(d, w6_ref[...], preferred_element_type=jnp.float32) + b6_ref[...]
    dec_ref[...] = jax.nn.sigmoid(logits).astype(dec_ref.dtype)           # Sigmoid


def prepare_params(params):
    """One-time (outside jit) layout prep.

    W -> (in, out) bf16; biases -> (1, out) f32.  Layers 3/4 are algebraically fused
    (no nonlinearity between them) into one (256, dlat_p + 256) weight whose first dlat_p
    columns are the (zero-padded) encoder head and whose last 256 columns are w3 @ w4.
    The decoder output dim is zero-padded to a multiple of 128 so its writeback is lane-dense.
    """
    f32 = jnp.float32
    input_dim = params["w1"].shape[1]
    latent_dim = params["w3"].shape[0]
    din_p = _round_up(input_dim, 128)
    dlat_p = _round_up(latent_dim, 128)

    w1 = jnp.asarray(params["w1"], f32).T      # (input_dim, 512)
    w2 = jnp.asarray(params["w2"], f32).T      # (512, 256)
    w3 = jnp.asarray(params["w3"], f32).T      # (256, latent_dim)
    w4 = jnp.asarray(params["w4"], f32).T      # (latent_dim, 256)
    w5 = jnp.asarray(params["w5"], f32).T      # (256, 512)
    w6 = jnp.asarray(params["w6"], f32).T      # (512, input_dim)
    b1 = jnp.asarray(params["b1"], f32)
    b2 = jnp.asarray(params["b2"], f32)
    b3 = jnp.asarray(params["b3"], f32)
    b4 = jnp.asarray(params["b4"], f32)
    b5 = jnp.asarray(params["b5"], f32)
    b6 = jnp.asarray(params["b6"], f32)

    # Fused bottleneck (f32 pre-multiply, then bf16 cast):
    #   z     = h2 @ w3 + b3
    #   d_pre = z @ w4 + b4 = h2 @ (w3 @ w4) + (b3 @ w4 + b4)
    w34 = w3 @ w4                                               # (256, 256)
    b34 = b3 @ w4 + b4                                          # (256,)
    w3_pad = jnp.pad(w3, ((0, 0), (0, dlat_p - latent_dim)))    # (256, dlat_p)
    b3_pad = jnp.pad(b3, (0, dlat_p - latent_dim))              # (dlat_p,)
    wz = jnp.concatenate([w3_pad, w34], axis=1).astype(jnp.bfloat16)   # (256, dlat_p+256)
    bz = jnp.concatenate([b3_pad, b34])[None, :]                       # (1, dlat_p+256) f32

    w6_pad = jnp.pad(w6, ((0, 0), (0, din_p - input_dim)))
    b6_pad = jnp.pad(b6, (0, din_p - input_dim))

    return dict(
        w1=w1.astype(jnp.bfloat16), b1=b1[None, :],
        w2=w2.astype(jnp.bfloat16), b2=b2[None, :],
        wz=wz, bz=bz,
        w5=w5.astype(jnp.bfloat16), b5=b5[None, :],
        w6=w6_pad.astype(jnp.bfloat16), b6=b6_pad[None, :],
    )


def _resident_spec(a):
    """Full-array, grid-invariant block; single-buffered (no benefit from double-buffering)."""
    return pl.BlockSpec(a.shape, lambda i: (0,) * a.ndim, pipeline_mode=pl.Buffered(1))


@functools.partial(jax.jit, static_argnames=("latent_dim", "batch_block"))
def autoencoder_forward(x, prepared, *, latent_dim, batch_block=1024):
    """x: (B, input_dim) f32. prepared: output of prepare_params. Returns (decoded, encoded) f32."""
    B, input_dim = x.shape
    p = prepared
    din_p = p["w6"].shape[1]
    dlat_p = p["wz"].shape[1] - 256

    bb, B_pad = _pick_batch_tile(B, batch_block)

    if B_pad != B:
        # Pad rows (in bf16 so the pad writeback is half-width); the kernel's cast is a no-op then.
        xk = jnp.pad(x.astype(jnp.bfloat16), ((0, B_pad - B), (0, 0)))
    else:
        # No wrapper-side HBM pass: feed f32 x straight in, cast to bf16 inside the kernel.
        xk = x

    flops = 2 * B_pad * (input_dim * 512 + 512 * 256 + 256 * (dlat_p + 256)
                         + 256 * 512 + 512 * din_p)
    weight_bytes = sum(int(v.size) * v.dtype.itemsize for v in p.values())
    bytes_accessed = int(xk.size) * xk.dtype.itemsize + weight_bytes \
        + B_pad * (din_p + dlat_p) * 4
    cost = pl.CostEstimate(flops=flops,
                           transcendentals=B_pad * din_p,     # sigmoid over padded lanes
                           bytes_accessed=int(bytes_accessed))

    kernel = functools.partial(_autoencoder_kernel, dlat_p=dlat_p)

    dec, enc = pl.pallas_call(
        kernel,
        out_shape=(
            jax.ShapeDtypeStruct((B_pad, din_p), jnp.float32),
            jax.ShapeDtypeStruct((B_pad, dlat_p), jnp.float32),
        ),
        grid_spec=pltpu.PrefetchScalarGridSpec(
            num_scalar_prefetch=0,
            grid=(B_pad // bb,),
            in_specs=[
                pl.BlockSpec((bb, input_dim), lambda i: (i, 0)),
                _resident_spec(p["w1"]), _resident_spec(p["b1"]),
                _resident_spec(p["w2"]), _resident_spec(p["b2"]),
                _resident_spec(p["wz"]), _resident_spec(p["bz"]),
                _resident_spec(p["w5"]), _resident_spec(p["b5"]),
                _resident_spec(p["w6"]), _resident_spec(p["b6"]),
            ],
            out_specs=[
                pl.BlockSpec((bb, din_p), lambda i: (i, 0)),
                pl.BlockSpec((bb, dlat_p), lambda i: (i, 0)),
            ],
        ),
        compiler_params=pltpu.CompilerParams(
            dimension_semantics=("parallel",),
            vmem_limit_bytes=48 * 1024 * 1024,   # > v5e's 16 MiB default, < v7x's 64 MiB physical
        ),
        cost_estimate=cost,
    )(xk, p["w1"], p["b1"], p["w2"], p["b2"], p["wz"], p["bz"],
      p["w5"], p["b5"], p["w6"], p["b6"])

    if B_pad != B or din_p != input_dim:
        dec = dec[:B, :input_dim]
    if B_pad != B or dlat_p != latent_dim:
        enc = enc[:B, :latent_dim]
    return dec, enc


def init_params(key, input_dim, latent_dim):
    """PyTorch nn.Linear-shaped params: W (out, in), b (out,), U(-1/sqrt(in), 1/sqrt(in)) init."""
    dims = [
        (input_dim, 512), (512, 256), (256, latent_dim),   # encoder
        (latent_dim, 256), (256, 512), (512, input_dim),   # decoder
    ]
    params = {}
    for idx, (fan_in, fan_out) in enumerate(dims, start=1):
        key, kw, kb = jax.random.split(key, 3)
        bound = 1.0 / jnp.sqrt(fan_in)
        params[f"w{idx}"] = jax.random.uniform(
            kw, (fan_out, fan_in), jnp.float32, minval=-bound, maxval=bound)
        params[f"b{idx}"] = jax.random.uniform(
            kb, (fan_out,), jnp.float32, minval=-bound, maxval=bound)
    return params


def _reference_forward(x, params):
    """Pure-JAX f32 reference mirroring the PyTorch forward."""
    h = jnp.maximum(x @ params["w1"].T + params["b1"], 0.0)
    h = jnp.maximum(h @ params["w2"].T + params["b2"], 0.0)
    enc = h @ params["w3"].T + params["b3"]
    d = jnp.maximum(enc @ params["w4"].T + params["b4"], 0.0)
    d = jnp.maximum(d @ params["w5"].T + params["b5"], 0.0)
    dec = jax.nn.sigmoid(d @ params["w6"].T + params["b6"])
    return dec, enc


if __name__ == "__main__":
    key = jax.random.PRNGKey(0)
    key, kx, kp, kx2 = jax.random.split(key, 4)

    batch, input_dim, latent_dim = 8, 64, 32
    x = jax.random.uniform(kx, (batch, input_dim), jnp.float32)  # sigmoid output ~ data in [0,1]
    params = init_params(kp, input_dim, latent_dim)
    prepared = prepare_params(params)            # one-time layout prep, outside jit

    decoded, encoded = autoencoder_forward(x, prepared, latent_dim=latent_dim)
    decoded = jax.block_until_ready(decoded)
    encoded = jax.block_until_ready(encoded)

    ref_dec, ref_enc = _reference_forward(x, params)
    assert decoded.shape == (batch, input_dim) and encoded.shape == (batch, latent_dim)
    # bf16 matmul inputs (and the f32-premultiplied, bf16-cast fused bottleneck) -> relaxed
    # tolerances vs. the f32 reference.
    assert jnp.allclose(decoded, ref_dec, atol=2e-2, rtol=2e-2), \
        float(jnp.max(jnp.abs(decoded - ref_dec)))
    assert jnp.allclose(encoded, ref_enc, atol=5e-2, rtol=5e-2), \
        float(jnp.max(jnp.abs(encoded - ref_enc)))

    # Larger batch: exercises the unpadded, multi-step (even) grid path where f32 x goes
    # straight into the kernel (2 grid steps -> both v7x TensorCores busy).
    x2 = jax.random.uniform(kx2, (384, input_dim), jnp.float32)
    dec2, enc2 = autoencoder_forward(x2, prepared, latent_dim=latent_dim)
    dec2 = jax.block_until_ready(dec2)
    enc2 = jax.block_until_ready(enc2)
    r_dec2, r_enc2 = _reference_forward(x2, params)
    assert dec2.shape == (384, input_dim) and enc2.shape == (384, latent_dim)
    assert jnp.allclose(dec2, r_dec2, atol=2e-2, rtol=2e-2)
    assert jnp.allclose(enc2, r_enc2, atol=5e-2, rtol=5e-2)

    print("KERNEL_OK")
</pallas_src>

<mosaic_0001>
module attributes {stable_mosaic.version = 11 : i64} {
  func.func @_autoencoder_kernel(%arg0: i32, %arg1: memref<16x64xbf16, #tpu.memory_space<vmem>>, %arg2: memref<64x512xbf16, #tpu.memory_space<vmem>>, %arg3: memref<1x512xf32, #tpu.memory_space<vmem>>, %arg4: memref<512x256xbf16, #tpu.memory_space<vmem>>, %arg5: memref<1x256xf32, #tpu.memory_space<vmem>>, %arg6: memref<256x384xbf16, #tpu.memory_space<vmem>>, %arg7: memref<1x384xf32, #tpu.memory_space<vmem>>, %arg8: memref<256x512xbf16, #tpu.memory_space<vmem>>, %arg9: memref<1x512xf32, #tpu.memory_space<vmem>>, %arg10: memref<512x128xbf16, #tpu.memory_space<vmem>>, %arg11: memref<1x128xf32, #tpu.memory_space<vmem>>, %arg12: memref<16x128xf32, #tpu.memory_space<vmem>>, %arg13: memref<16x128xf32, #tpu.memory_space<vmem>>) attributes {dimension_semantics = [#tpu.dimension_semantics<parallel>], iteration_bounds = array<i64: 1>, scalar_prefetch = 0 : i64, scratch_operands = 0 : i64, tpu.core_type = #tpu.core_type<tc>, window_params = [{transform_indices = @transform_0, window_bounds = array<i64: 16, 64>}, {pipeline_mode = #tpu.pipeline_mode<synchronous>, transform_indices = @transform_1, window_bounds = array<i64: 64, 512>}, {pipeline_mode = #tpu.pipeline_mode<synchronous>, transform_indices = @transform_2, window_bounds = array<i64: 1, 512>}, {pipeline_mode = #tpu.pipeline_mode<synchronous>, transform_indices = @transform_3, window_bounds = array<i64: 512, 256>}, {pipeline_mode = #tpu.pipeline_mode<synchronous>, transform_indices = @transform_4, window_bounds = array<i64: 1, 256>}, {pipeline_mode = #tpu.pipeline_mode<synchronous>, transform_indices = @transform_5, window_bounds = array<i64: 256, 384>}, {pipeline_mode = #tpu.pipeline_mode<synchronous>, transform_indices = @transform_6, window_bounds = array<i64: 1, 384>}, {pipeline_mode = #tpu.pipeline_mode<synchronous>, transform_indices = @transform_7, window_bounds = array<i64: 256, 512>}, {pipeline_mode = #tpu.pipeline_mode<synchronous>, transform_indices = @transform_8, window_bounds = array<i64: 1, 512>}, {pipeline_mode = #tpu.pipeline_mode<synchronous>, transform_indices = @transform_9, window_bounds = array<i64: 512, 128>}, {pipeline_mode = #tpu.pipeline_mode<synchronous>, transform_indices = @transform_10, window_bounds = array<i64: 1, 128>}, {transform_indices = @transform_11, window_bounds = array<i64: 16, 128>}, {transform_indices = @transform_12, window_bounds = array<i64: 16, 128>}]} {
    %c0 = arith.constant 0 : index
    %c0_0 = arith.constant 0 : index
    %0 = vector.load %arg1[%c0, %c0_0] : memref<16x64xbf16, #tpu.memory_space<vmem>>, vector<16x64xbf16>
    %c0_1 = arith.constant 0 : index
    %c0_2 = arith.constant 0 : index
    %1 = vector.load %arg2[%c0_1, %c0_2] : memref<64x512xbf16, #tpu.memory_space<vmem>>, vector<64x512xbf16>
    %cst = arith.constant dense<0.000000e+00> : vector<16x512xf32>
    %2 = tpu.matmul %0, %1, %cst {dimension_numbers = #tpu.dot_dimension_numbers<[1], [0], [0], [1], [0, 0, 1, 1], [], []>} : vector<16x64xbf16>, vector<64x512xbf16>, vector<16x512xf32> -> vector<16x512xf32>
    %c0_3 = arith.constant 0 : index
    %c0_4 = arith.constant 0 : index
    %3 = vector.load %arg3[%c0_3, %c0_4] : memref<1x512xf32, #tpu.memory_space<vmem>>, vector<1x512xf32>
    %4 = vector.broadcast %3 : vector<1x512xf32> to vector<16x512xf32>
    %5 = arith.addf %2, %4 : vector<16x512xf32>
    %cst_5 = arith.constant 0.000000e+00 : f32
    %6 = vector.broadcast %cst_5 : f32 to vector<16x512xf32>
    %7 = arith.maximumf %5, %6 : vector<16x512xf32>
    %8 = arith.truncf %7 : vector<16x512xf32> to vector<16x512xbf16>
    %c0_6 = arith.constant 0 : index
    %c0_7 = arith.constant 0 : index
    %9 = vector.load %arg4[%c0_6, %c0_7] : memref<512x256xbf16, #tpu.memory_space<vmem>>, vector<512x256xbf16>
    %cst_8 = arith.constant dense<0.000000e+00> : vector<16x256xf32>
    %10 = tpu.matmul %8, %9, %cst_8 {dimension_numbers = #tpu.dot_dimension_numbers<[1], [0], [0], [1], [0, 0, 1, 1], [], []>} : vector<16x512xbf16>, vector<512x256xbf16>, vector<16x256xf32> -> vector<16x256xf32>
    %c0_9 = arith.constant 0 : index
    %c0_10 = arith.constant 0 : index
    %11 = vector.load %arg5[%c0_9, %c0_10] : memref<1x256xf32, #tpu.memory_space<vmem>>, vector<1x256xf32>
    %12 = vector.broadcast %11 : vector<1x256xf32> to vector<16x256xf32>
    %13 = arith.addf %10, %12 : vector<16x256xf32>
    %cst_11 = arith.constant 0.000000e+00 : f32
    %14 = vector.broadcast %cst_11 : f32 to vector<16x256xf32>
    %15 = arith.maximumf %13, %14 : vector<16x256xf32>
    %16 = arith.truncf %15 : vector<16x256xf32> to vector<16x256xbf16>
    %c0_12 = arith.constant 0 : index
    %c0_13 = arith.constant 0 : index
    %17 = vector.load %arg6[%c0_12, %c0_13] : memref<256x384xbf16, #tpu.memory_space<vmem>>, vector<256x384xbf16>
    %cst_14 = arith.constant dense<0.000000e+00> : vector<16x384xf32>
    %18 = tpu.matmul %16, %17, %cst_14 {dimension_numbers = #tpu.dot_dimension_numbers<[1], [0], [0], [1], [0, 0, 1, 1], [], []>} : vector<16x256xbf16>, vector<256x384xbf16>, vector<16x384xf32> -> vector<16x384xf32>
    %c0_15 = arith.constant 0 : index
    %c0_16 = arith.constant 0 : index
    %19 = vector.load %arg7[%c0_15, %c0_16] : memref<1x384xf32, #tpu.memory_space<vmem>>, vector<1x384xf32>
    %20 = vector.broadcast %19 : vector<1x384xf32> to vector<16x384xf32>
    %21 = arith.addf %18, %20 : vector<16x384xf32>
    %22 = vector.extract_strided_slice %21 {offsets = [0, 0], sizes = [16, 128], strides = [1, 1]} : vector<16x384xf32> to vector<16x128xf32>
    %c0_17 = arith.constant 0 : index
    %c0_18 = arith.constant 0 : index
    %23 = vector.load %arg13[%c0_17, %c0_18] : memref<16x128xf32, #tpu.memory_space<vmem>>, vector<16x128xf32>
    tpu.vector_store %arg13[%c0_17, %c0_18], %22 {strides = array<i32>} : memref<16x128xf32, #tpu.memory_space<vmem>>, vector<16x128xf32>,
    %24 = vector.extract_strided_slice %21 {offsets = [0, 128], sizes = [16, 256], strides = [1, 1]} : vector<16x384xf32> to vector<16x256xf32>
    %cst_19 = arith.constant 0.000000e+00 : f32
    %25 = vector.broadcast %cst_19 : f32 to vector<16x256xf32>
    %26 = arith.maximumf %24, %25 : vector<16x256xf32>
    %27 = arith.truncf %26 : vector<16x256xf32> to vector<16x256xbf16>
    %c0_20 = arith.constant 0 : index
    %c0_21 = arith.constant 0 : index
    %28 = vector.load %arg8[%c0_20, %c0_21] : memref<256x512xbf16, #tpu.memory_space<vmem>>, vector<256x512xbf16>
    %cst_22 = arith.constant dense<0.000000e+00> : vector<16x512xf32>
    %29 = tpu.matmul %27, %28, %cst_22 {dimension_numbers = #tpu.dot_dimension_numbers<[1], [0], [0], [1], [0, 0, 1, 1], [], []>} : vector<16x256xbf16>, vector<256x512xbf16>, vector<16x512xf32> -> vector<16x512xf32>
    %c0_23 = arith.constant 0 : index
    %c0_24 = arith.constant 0 : index
    %30 = vector.load %arg9[%c0_23, %c0_24] : memref<1x512xf32, #tpu.memory_space<vmem>>, vector<1x512xf32>
    %31 = vector.broadcast %30 : vector<1x512xf32> to vector<16x512xf32>
    %32 = arith.addf %29, %31 : vector<16x512xf32>
    %cst_25 = arith.constant 0.000000e+00 : f32
    %33 = vector.broadcast %cst_25 : f32 to vector<16x512xf32>
    %34 = arith.maximumf %32, %33 : vector<16x512xf32>
    %35 = arith.truncf %34 : vector<16x512xf32> to vector<16x512xbf16>
    %c0_26 = arith.constant 0 : index
    %c0_27 = arith.constant 0 : index
    %36 = vector.load %arg10[%c0_26, %c0_27] : memref<512x128xbf16, #tpu.memory_space<vmem>>, vector<512x128xbf16>
    %cst_28 = arith.constant dense<0.000000e+00> : vector<16x128xf32>
    %37 = tpu.matmul %35, %36, %cst_28 {dimension_numbers = #tpu.dot_dimension_numbers<[1], [0], [0], [1], [0, 0, 1, 1], [], []>} : vector<16x512xbf16>, vector<512x128xbf16>, vector<16x128xf32> -> vector<16x128xf32>
    %c0_29 = arith.constant 0 : index
    %c0_30 = arith.constant 0 : index
    %38 = vector.load %arg11[%c0_29, %c0_30] : memref<1x128xf32, #tpu.memory_space<vmem>>, vector<1x128xf32>
    %39 = vector.broadcast %38 : vector<1x128xf32> to vector<16x128xf32>
    %40 = arith.addf %37, %39 : vector<16x128xf32>
    %41 = arith.negf %40 : vector<16x128xf32>
    %42 = math.exp %41 : vector<16x128xf32>
    %cst_31 = arith.constant 1.000000e+00 : f32
    %43 = vector.broadcast %cst_31 : f32 to vector<16x128xf32>
    %44 = arith.addf %43, %42 : vector<16x128xf32>
    %45 = arith.divf %43, %44 : vector<16x128xf32>
    %c0_32 = arith.constant 0 : index
    %c0_33 = arith.constant 0 : index
    %46 = vector.load %arg12[%c0_32, %c0_33] : memref<16x128xf32, #tpu.memory_space<vmem>>, vector<16x128xf32>
    tpu.vector_store %arg12[%c0_32, %c0_33], %45 {strides = array<i32>} : memref<16x128xf32, #tpu.memory_space<vmem>>, vector<16x128xf32>,
    return
  }
  func.func @transform_0(%arg0: i32) -> (i32, i32) {
    %c0_i32 = arith.constant 0 : i32
    %c0_i32_0 = arith.constant 0 : i32
    return %arg0, %c0_i32 : i32, i32
  }
  func.func @transform_1(%arg0: i32) -> (i32, i32) {
    %c0_i32 = arith.constant 0 : i32
    %c0_i32_0 = arith.constant 0 : i32
    %c0_i32_1 = arith.constant 0 : i32
    return %c0_i32, %c0_i32_0 : i32, i32
  }
  func.func @transform_2(%arg0: i32) -> (i32, i32) {
    %c0_i32 = arith.constant 0 : i32
    %c0_i32_0 = arith.constant 0 : i32
    %c0_i32_1 = arith.constant 0 : i32
    return %c0_i32, %c0_i32_0 : i32, i32
  }
  func.func @transform_3(%arg0: i32) -> (i32, i32) {
    %c0_i32 = arith.constant 0 : i32
    %c0_i32_0 = arith.constant 0 : i32
    %c0_i32_1 = arith.constant 0 : i32
    return %c0_i32, %c0_i32_0 : i32, i32
  }
  func.func @transform_4(%arg0: i32) -> (i32, i32) {
    %c0_i32 = arith.constant 0 : i32
    %c0_i32_0 = arith.constant 0 : i32
    %c0_i32_1 = arith.constant 0 : i32
    return %c0_i32, %c0_i32_0 : i32, i32
  }
  func.func @transform_5(%arg0: i32) -> (i32, i32) {
    %c0_i32 = arith.constant 0 : i32
    %c0_i32_0 = arith.constant 0 : i32
    %c0_i32_1 = arith.constant 0 : i32
    return %c0_i32, %c0_i32_0 : i32, i32
  }
  func.func @transform_6(%arg0: i32) -> (i32, i32) {
    %c0_i32 = arith.constant 0 : i32
    %c0_i32_0 = arith.constant 0 : i32
    %c0_i32_1 = arith.constant 0 : i32
    return %c0_i32, %c0_i32_0 : i32, i32
  }
  func.func @transform_7(%arg0: i32) -> (i32, i32) {
    %c0_i32 = arith.constant 0 : i32
    %c0_i32_0 = arith.constant 0 : i32
    %c0_i32_1 = arith.constant 0 : i32
    return %c0_i32, %c0_i32_0 : i32, i32
  }
  func.func @transform_8(%arg0: i32) -> (i32, i32) {
    %c0_i32 = arith.constant 0 : i32
    %c0_i32_0 = arith.constant 0 : i32
    %c0_i32_1 = arith.constant 0 : i32
    return %c0_i32, %c0_i32_0 : i32, i32
  }
  func.func @transform_9(%arg0: i32) -> (i32, i32) {
    %c0_i32 = arith.constant 0 : i32
    %c0_i32_0 = arith.constant 0 : i32
    %c0_i32_1 = arith.constant 0 : i32
    return %c0_i32, %c0_i32_0 : i32, i32
  }
  func.func @transform_10(%arg0: i32) -> (i32, i32) {
    %c0_i32 = arith.constant 0 : i32
    %c0_i32_0 = arith.constant 0 : i32
    %c0_i32_1 = arith.constant 0 : i32
    return %c0_i32, %c0_i32_0 : i32, i32
  }
  func.func @transform_11(%arg0: i32) -> (i32, i32) {
    %c0_i32 = arith.constant 0 : i32
    %c0_i32_0 = arith.constant 0 : i32
    return %arg0, %c0_i32 : i32, i32
  }
  func.func @transform_12(%arg0: i32) -> (i32, i32) {
    %c0_i32 = arith.constant 0 : i32
    %c0_i32_0 = arith.constant 0 : i32
    return %arg0, %c0_i32 : i32, i32
  }
}

</mosaic_0001>

<bundles_post_ra>
// kernel: autoencoder_forward.1
= control target key start
LH: loop header
LB: loop body
LE: loop exit
PB: predicated region body
PF: predicated region fallthrough
CT: control target
= control target key end

     0   :  { %18 = vsyncpa [#allocation3], 0  ;;  %s3017_s0 = inlined_call_operand.vmem [shape: bf16[16,64], index: 0, kind: input, shape index: {}]   ;;  %s3018_s1 = inlined_call_operand.hbm [shape: bf16[64,512], index: 1, kind: input, shape index: {}]   ;;  %s3019_s2 = inlined_call_operand.vmem [shape: f32[1,512], index: 2, kind: input, shape index: {}]   ;;  %s3020_s3 = inlined_call_operand.hbm [shape: bf16[512,256], index: 3, kind: input, shape index: {}]   ;;  %s3021_s4 = inlined_call_operand.vmem [shape: f32[1,256], index: 4, kind: input, shape index: {}]   ;;  %s3022_s5 = inlined_call_operand.hbm [shape: bf16[256,384], index: 5, kind: input, shape index: {}]   ;;  %s3023_s6 = inlined_call_operand.vmem [shape: f32[1,384], index: 6, kind: input, shape index: {}]   ;;  %s3024_s7 = inlined_call_operand.hbm [shape: bf16[256,512], index: 7, kind: input, shape index: {}]   ;;  %s3025_s8 = inlined_call_operand.vmem [shape: f32[1,512], index: 8, kind: input, shape index: {}]   ;;  %s3026_s9 = inlined_call_operand.hbm [shape: bf16[512,128], index: 9, kind: input, shape index: {}]   ;;  %s3027_s10 = inlined_call_operand.vmem [shape: f32[1,128], index: 10, kind: input, shape index: {}]   ;;  %s3028_s11 = inlined_call_operand.vmem [shape: f32[16,128], index: 11, kind: output, shape index: {0}]   ;;  %s3029_s12 = inlined_call_operand.vmem [shape: f32[16,128], index: 12, kind: output, shape index: {1}]  }
   0x1   :  { %19 = vsyncpa [#allocation5], 0 }
   0x2   :  { %20 = vsyncpa [#allocation8], 0  ;;  %s2864_s21 = smov [#allocation4]  }
   0x3   :  { %s42_s22 = sshll.u32 %s2864_s21, 4  ;;  %s43_s22 = int_to_ptr.vmem [resolvable:$true] %s42_s22 }
   0x4   :  { %s2766_s23 = scalar_lea.vmem %s43_s22, 8192  ;;  %p2771_p1 = scmp.lt.s32.totalorder %s43_s22, %s43_s22 }
   0x5   :  { %p2767_p0 = scmp.ne.s32.totalorder %s43_s22, %s2766_s23  ;;  %p2772_p2 = scmp.lt.s32.totalorder %s2766_s23, %s2766_s23 }
   0x7   :  { %p2773_p3 = por %p2772_p2, %p2771_p1 }
   0x9   :  { %p2774_p4 = pnand %p2773_p3, %p2767_p0 }
   0xb   :  { %2777 = shalt.err (!%p2774_p4)
}
   0xc   :  { %s2865_s24 = smov 128   ;;  %s2866_s25 = smov 8  }
   0xd   :  { %48 = dma.hbm_to_vmem [thread:$0]  %s3020_s3, 8192, %s43_s22, [#allocation5], %s2865_s24, %s2865_s24, %s2866_s25  }
   0xe   :  { %s2867_s28 = smov [#allocation7]   ;;  %s2868_s30 = smov [#allocation2]  }
   0xf   :  { %s70_s29 = sshll.u32 %s2867_s28, 4  ;;  %s28_s13 = sshll.u32 %s2868_s30, 4  ;;  %s71_s29 = int_to_ptr.vmem [resolvable:$true] %s70_s29  ;;  %s29_s13 = int_to_ptr.vmem [resolvable:$true] %s28_s13 }
  0x10   :  { %s2786_s14 = scalar_lea.vmem %s71_s29, 8192  ;;  %p2791_p6 = scmp.lt.s32.totalorder %s71_s29, %s71_s29 }
  0x11   :  { %p2787_p5 = scmp.ne.s32.totalorder %s71_s29, %s2786_s14  ;;  %p2792_p7 = scmp.lt.s32.totalorder %s2786_s14, %s2786_s14 }
  0x13   :  { %p2793_p8 = por %p2792_p7, %p2791_p6 }
  0x15   :  { %p2794_p9 = pnand %p2793_p8, %p2787_p5 }
  0x17   :  { %2797 = shalt.err (!%p2794_p9)
}
  0x18   :  { %s2869_s15 = smov 256   ;;  %s2870_s16 = smov 16  }
  0x19   :  { %76 = dma.hbm_to_vmem [thread:$0]  %s3024_s7, 8192, %s71_s29, [#allocation8], %s2869_s15, %s2869_s15, %s2870_s16  }
  0x1a   :  { %s2806_s3 = scalar_lea.vmem %s29_s13, 2048  ;;  %p2811_p11 = scmp.lt.s32.totalorder %s29_s13, %s29_s13 }
  0x1b   :  { %p2807_p10 = scmp.ne.s32.totalorder %s29_s13, %s2806_s3  ;;  %p2812_p12 = scmp.lt.s32.totalorder %s2806_s3, %s2806_s3 }
  0x1d   :  { %p2813_p13 = por %p2812_p12, %p2811_p11 }
  0x1f   :  { %p2814_p0 = pnand %p2813_p13, %p2807_p10 }
  0x21   :  { %2817 = shalt.err (!%p2814_p0)
}
  0x22   :  { %34 = dma.hbm_to_vmem [thread:$0]  %s3018_s1, 2048, %s29_s13, [#allocation3], %s2869_s15, %s2869_s15, %s2870_s16  }
  0x23   :  { %s2871_s21 = smov [#allocation6]  }
  0x24   :  { %s56_s22 = sshll.u32 %s2871_s21, 4  ;;  %s57_s22 = int_to_ptr.vmem [resolvable:$true] %s56_s22 }
  0x25   :  { %s2826_s23 = scalar_lea.vmem %s57_s22, 6144  ;;  %p2831_p2 = scmp.lt.s32.totalorder %s57_s22, %s57_s22 }
  0x26   :  { %p2827_p1 = scmp.ne.s32.totalorder %s57_s22, %s2826_s23  ;;  %p2832_p3 = scmp.lt.s32.totalorder %s2826_s23, %s2826_s23 }
  0x28   :  { %p2833_p4 = por %p2832_p3, %p2831_p2 }
  0x2a   :  { %p2834_p5 = pnand %p2833_p4, %p2827_p1 }
  0x2c   :  { %2837 = shalt.err (!%p2834_p5)
}
  0x2d   :  { %s2872_s7 = smov 192   ;;  %s2873_s24 = smov 12  }
  0x2e   :  { %62 = dma.hbm_to_vmem [thread:$0]  %s3022_s5, 6144, %s57_s22, [#allocation5], %s2872_s7, %s2872_s7, %s2873_s24  }
  0x2f   :  { %s2874_s27 = smov [#allocation9]  }
  0x30   :  { %s84_s28 = sshll.u32 %s2874_s27, 4  ;;  %s85_s28 = int_to_ptr.vmem [resolvable:$true] %s84_s28 }
  0x31   :  { %s2846_s1 = scalar_lea.vmem %s85_s28, 4096  ;;  %p2851_p7 = scmp.lt.s32.totalorder %s85_s28, %s85_s28 }
  0x32   :  { %p2847_p6 = scmp.ne.s32.totalorder %s85_s28, %s2846_s1  ;;  %p2852_p8 = scmp.lt.s32.totalorder %s2846_s1, %s2846_s1 }
  0x34   :  { %p2853_p9 = por %p2852_p8, %p2851_p7 }
  0x36   :  { %p2854_p10 = pnand %p2853_p9, %p2847_p6 }
  0x38   :  { %2857 = shalt.err (!%p2854_p10)
}
  0x39   :  { %s2875_s29 = smov 64   ;;  %s2876_s30 = smov 4  }
  0x3a   :  { %90 = dma.hbm_to_vmem [thread:$0]  %s3026_s9, 4096, %s85_s28, [#allocation8], %s2875_s29, %s2875_s29, %s2876_s30  }
  0x3b   :  { %2858 = dma.done.wait [#allocation3], 2048  }
  0x3c   :  { %2859 = vsyncadd [#allocation3], 4294965248 }
  0x3d   :  { %2860 = dma.done.wait [#allocation5], 14336  }
  0x3e   :  { %2861 = vsyncadd [#allocation5], 4294952960 }
  0x3f   :  { %2862 = dma.done.wait [#allocation8], 12288  }
  0x40   :  { %2863 = vsyncadd [#allocation8], 4294955008  ;;  %v2877_v0 = vmov 0   ;;  %v2437_v1 = vld [vmem:[#allocation2 + $0x64] ss:$16 sps:$4 sm:$0xff]   ;;  %vm234_vm0 = vcmask 523264  }
  0x41   :  { %270 = vmatprep.mubr.bf16.mxu1 %v2877_v0  ;;  %v2439_v2 = vld [vmem:[#allocation2 + $0x60] ss:$16 sps:$4 sm:$0xff]   ;;  %246 = vmatprep.subr.bf16.mxu1 %v2437_v1  ;;  %v2440_v3 = vld [vmem:[#allocation2 + $0x44] ss:$16 sps:$4 sm:$0xff]   ;;  %v2452_v9 = vld [vmem:[#allocation2 + $0x6c] ss:$16 sps:$4 sm:$0xff]  }
  0x42   :  { %247 = vmatpush1.bf16.msra.mxu1 %v2439_v2  ;;  %v2442_v4 = vld [vmem:[#allocation2 + $0x40] ss:$16 sps:$4 sm:$0xff]   ;;  %v2443_v5 = vld [vmem:[#allocation2 + $0x24] ss:$16 sps:$4 sm:$0xff]   ;;  %v2450_v14 = vld [vmem:[#allocation2 + $0x68] ss:$16 sps:$4 sm:$0xff]  }
  0x43   :  { %248 = vmatprep.subr.bf16.mxu1 %v2440_v3  ;;  %v2445_v6 = vld [vmem:[#allocation2 + $0x20] ss:$16 sps:$4 sm:$0xff]   ;;  %v2446_v7 = vld [vmem:[#allocation2 + $0x4] ss:$16 sps:$4 sm:$0xff]   ;;  %v2455_v15 = vld [vmem:[#allocation2 + $0x4c] ss:$16 sps:$4 sm:$0xff]  }
  0x44   :  { %v2448_v8 = vld [vmem:[#allocation2] ss:$16 sps:$4 sm:$0xff]   ;;  %v2462_v10 = vld [vmem:[#allocation4 + $0x74] ss:$8 sps:$4 sm:$0xff]   ;;  %v2465_v12 = vld [vmem:[#allocation4 + $0x64] ss:$8 sps:$4 sm:$0xff]  }
  0x45   :  { %v2464_v11 = vld [vmem:[#allocation4 + $0x70] ss:$8 sps:$4 sm:$0xff]   ;;  %v2449_v13 = vld [vmem:[%s3017_s0] sm:$0xff]   ;;  %732 = vmatprep.subr.bf16.mxu0 %v2462_v10  ;;  %v2468_v17 = vld [vmem:[#allocation4 + $0x54] ss:$8 sps:$4 sm:$0xff]  }
  0x46   :  { %249 = vmatpush1.bf16.msra.mxu1 %v2442_v4  ;;  %733 = vmatpush1.bf16.msra.mxu0 %v2464_v11  ;;  %v2467_v16 = vld [vmem:[#allocation4 + $0x60] ss:$8 sps:$4 sm:$0xff]   ;;  %v2458_v19 = vld [vmem:[#allocation2 + $0x2c] ss:$16 sps:$4 sm:$0xff]   ;;  %v2470_v20 = vld [vmem:[#allocation4 + $0x50] ss:$8 sps:$4 sm:$0xff]  }
  0x47   :  { %250 = vmatprep.subr.bf16.mxu1 %v2443_v5  ;;  %734 = vmatprep.subr.bf16.mxu0 %v2465_v12  ;;  %v2453_v18 = vld [vmem:[#allocation2 + $0x48] ss:$16 sps:$4 sm:$0xff]   ;;  %v2471_v21 = vld [vmem:[#allocation4 + $0x44] ss:$8 sps:$4 sm:$0xff]   ;;  %v2474_v25 = vld [vmem:[#allocation4 + $0x34] ss:$8 sps:$4 sm:$0xff]  }
  0x48   :  { %v2456_v22 = vld [vmem:[#allocation2 + $0x28] ss:$16 sps:$4 sm:$0xff]   ;;  %v2461_v23 = vld [vmem:[#allocation2 + $0xc] ss:$16 sps:$4 sm:$0xff]  }
  0x49   :  { %v2473_v24 = vld [vmem:[#allocation4 + $0x40] ss:$8 sps:$4 sm:$0xff]   ;;  %v2478_v27 = vld [vmem:[#allocation4 + $0x174] ss:$8 sps:$4 sm:$0xff]   ;;  %v2479_v28 = vld [vmem:[#allocation4 + $0x30] ss:$8 sps:$4 sm:$0xff]  }
  0x4a   :  { %251 = vmatpush1.bf16.msra.mxu1 %v2445_v6  ;;  %735 = vmatpush1.bf16.msra.mxu0 %v2467_v16  ;;  %v2459_v26 = vld [vmem:[#allocation2 + $0x8] ss:$16 sps:$4 sm:$0xff]   ;;  %v2480_v29 = vld [vmem:[#allocation4 + $0x24] ss:$8 sps:$4 sm:$0xff]   ;;  %v2486_v33 = vld [vmem:[#allocation4 + $0x14] ss:$8 sps:$4 sm:$0xff]  }
  0x4b   :  { %252 = vmatprep.subr.bf16.mxu1 %v2446_v7  ;;  %736 = vmatprep.subr.bf16.mxu0 %v2468_v17  ;;  %v2476_v30 = vld [vmem:[#allocation4 + $0x170] ss:$8 sps:$4 sm:$0xff]   ;;  %v2484_v31 = vld [vmem:[#allocation4 + $0x164] ss:$8 sps:$4 sm:$0xff]   ;;  %v2485_v32 = vld [vmem:[#allocation4 + $0x20] ss:$8 sps:$4 sm:$0xff]  }
  0x4c   :  { %v2482_v34 = vld [vmem:[#allocation4 + $0x160] ss:$8 sps:$4 sm:$0xff]   ;;  %v2490_v35 = vld [vmem:[#allocation4 + $0x154] ss:$8 sps:$4 sm:$0xff]   ;;  %v2491_v36 = vld [vmem:[#allocation4 + $0x10] ss:$8 sps:$4 sm:$0xff]  }
  0x4d   :  { %v2492_v37 = vld [vmem:[#allocation4 + $0x4] ss:$8 sps:$4 sm:$0xff]   ;;  %v2488_v38 = vld [vmem:[#allocation4 + $0x150] ss:$8 sps:$4 sm:$0xff]   ;;  %v2497_v40 = vld [vmem:[#allocation4] ss:$8 sps:$4 sm:$0xff]  }
  0x4e   :  { %253 = vmatpush1.bf16.msra.mxu1 %v2448_v8  ;;  %737 = vmatpush1.bf16.msra.mxu0 %v2470_v20  ;;  %v2496_v39 = vld [vmem:[#allocation4 + $0x144] ss:$8 sps:$4 sm:$0xff]   ;;  %v2494_v41 = vld [vmem:[#allocation4 + $0x140] ss:$8 sps:$4 sm:$0xff]   ;;  %v2498_v42 = vld [vmem:[#allocation4 + $0xf4] ss:$8 sps:$4 sm:$0xff]   ;;  %v129_v20 = vlaneseq }
  0x4f   :  { %289 = vmatprep.subr.bf16.mxu1 %v2452_v9  ;;  %738 = vmatprep.subr.bf16.mxu0 %v2471_v21  ;;  %v2502_v43 = vld [vmem:[#allocation4 + $0x134] ss:$8 sps:$4 sm:$0xff]   ;;  %v2503_v44 = vld [vmem:[#allocation4 + $0xf0] ss:$8 sps:$4 sm:$0xff]   ;;  %v2504_v45 = vld [vmem:[#allocation4 + $0xe4] ss:$8 sps:$4 sm:$0xff]  }
  0x50   :  { %v2500_v46 = vld [vmem:[#allocation4 + $0x130] ss:$8 sps:$4 sm:$0xff]   ;;  %v2508_v47 = vld [vmem:[#allocation4 + $0x124] ss:$8 sps:$4 sm:$0xff]   ;;  %v2509_v48 = vld [vmem:[#allocation4 + $0xe0] ss:$8 sps:$4 sm:$0xff]  }
  0x51   :  { %2144 = vmatmul.mubr.msk.bf16.vlgmr.msra.gmra.mxu1 %vm234_vm0, %v2449_v13  ;;  %v2510_v49 = vld [vmem:[#allocation4 + $0xd4] ss:$8 sps:$4 sm:$0xff]   ;;  %v2506_v50 = vld [vmem:[#allocation4 + $0x120] ss:$8 sps:$4 sm:$0xff]   ;;  %v2515_v52 = vld [vmem:[#allocation4 + $0xd0] ss:$8 sps:$4 sm:$0xff]  }
  0x52   :  { %290 = vmatpush1.bf16.msra.mxu1 %v2450_v14  ;;  %313 = vmatprep.mubr.bf16.mxu1 %v2877_v0  ;;  %v2514_v51 = vld [vmem:[#allocation4 + $0x114] ss:$8 sps:$4 sm:$0xff]   ;;  %v2516_v53 = vld [vmem:[#allocation4 + $0xc4] ss:$8 sps:$4 sm:$0xff]   ;;  %v2512_v54 = vld [vmem:[#allocation4 + $0x110] ss:$8 sps:$4 sm:$0xff]  }
  0x53   :  { %291 = vmatprep.subr.bf16.mxu1 %v2455_v15  ;;  %739 = vmatpush1.bf16.msra.mxu0 %v2473_v24  ;;  %v2520_v55 = vld [vmem:[#allocation4 + $0x104] ss:$8 sps:$4 sm:$0xff]   ;;  %v2521_v56 = vld [vmem:[#allocation4 + $0xc0] ss:$8 sps:$4 sm:$0xff]   ;;  %v2522_v57 = vld [vmem:[#allocation4 + $0xb4] ss:$8 sps:$4 sm:$0xff]  }
  0x54   :  { %740 = vmatprep.subr.bf16.mxu0 %v2474_v25  ;;  %v2518_v58 = vld [vmem:[#allocation4 + $0x100] ss:$8 sps:$4 sm:$0xff]   ;;  %v2526_v59 = vld [vmem:[#allocation4 + $0x1f4] ss:$8 sps:$4 sm:$0xff]   ;;  %v2527_v60 = vld [vmem:[#allocation4 + $0xb0] ss:$8 sps:$4 sm:$0xff]  }
  0x55   :  { %v2524_v61 = vld [vmem:[#allocation4 + $0x1f0] ss:$8 sps:$4 sm:$0xff]   ;;  %v2528_v62 = vld [vmem:[#allocation4 + $0xa4] ss:$8 sps:$4 sm:$0xff]   ;;  %v2530_v0 = vld [vmem:[#allocation4 + $0x1e0] ss:$8 sps:$4 sm:$0xff]  }
  0x56   :  { %292 = vmatpush1.bf16.msra.mxu1 %v2453_v18  ;;  %v2532_v63 = vld [vmem:[#allocation4 + $0x1e4] ss:$8 sps:$4 sm:$0xff]   ;;  %v2533_v1 = vld [vmem:[#allocation4 + $0xa0] ss:$8 sps:$4 sm:$0xff]   ;;  %v2534_v2 = vld [vmem:[#allocation4 + $0x94] ss:$8 sps:$4 sm:$0xff]  }
  0x57   :  { %293 = vmatprep.subr.bf16.mxu1 %v2458_v19  ;;  %741 = vmatpush1.bf16.msra.mxu0 %v2479_v28  ;;  %v2538_v3 = vld [vmem:[#allocation4 + $0x1d4] ss:$8 sps:$4 sm:$0xff]   ;;  %v2536_v4 = vld [vmem:[#allocation4 + $0x1d0] ss:$8 sps:$4 sm:$0xff]   ;;  %v2540_v6 = vld [vmem:[#allocation4 + $0x84] ss:$8 sps:$4 sm:$0xff]  }
  0x58   :  { %742 = vmatprep.subr.bf16.mxu0 %v2480_v29  ;;  %v2539_v5 = vld [vmem:[#allocation4 + $0x90] ss:$8 sps:$4 sm:$0xff]   ;;  %v2544_v7 = vld [vmem:[#allocation4 + $0x1c4] ss:$8 sps:$4 sm:$0xff]   ;;  %v2542_v8 = vld [vmem:[#allocation4 + $0x1c0] ss:$8 sps:$4 sm:$0xff]  }
  0x59   :  { %v2545_v9 = vld [vmem:[#allocation4 + $0x80] ss:$8 sps:$4 sm:$0xff]   ;;  %v2548_v10 = vld [vmem:[#allocation4 + $0x1b4] ss:$8 sps:$4 sm:$0xff]   ;;  %v2546_v11 = vld [vmem:[#allocation4 + $0x1b0] ss:$8 sps:$4 sm:$0xff]  }
  0x5a   :  { %294 = vmatpush1.bf16.msra.mxu1 %v2456_v22  ;;  %v2551_v12 = vld [vmem:[#allocation4 + $0x1a4] ss:$8 sps:$4 sm:$0xff]   ;;  %v2554_v14 = vld [vmem:[#allocation4 + $0x194] ss:$8 sps:$4 sm:$0xff]   ;;  %v2552_v15 = vld [vmem:[#allocation4 + $0x190] ss:$8 sps:$4 sm:$0xff]  }
  0x5b   :  { %295 = vmatprep.subr.bf16.mxu1 %v2461_v23  ;;  %743 = vmatpush1.bf16.msra.mxu0 %v2485_v32  ;;  %v2557_v16 = vld [vmem:[#allocation4 + $0x184] ss:$8 sps:$4 sm:$0xff]   ;;  %v2555_v17 = vld [vmem:[#allocation4 + $0x180] ss:$8 sps:$4 sm:$0xff]   ;;  %v2585_v19 = vld [vmem:[#allocation6 + $0x170] ss:$12 sps:$4 sm:$0xff]  }
  0x5c   :  { %744 = vmatprep.subr.bf16.mxu0 %v2486_v33  ;;  %v2560_v18 = vld [vmem:[#allocation6 + $0xac] ss:$12 sps:$4 sm:$0xff]   ;;  %v2963_v21 = vshrl.u32 %v129_v20, 7  ;;  %v127_v23 = vld [vmem:[%s3019_s2] sm:$0xf] }
  0x5d   :  { %v2596_v20 = vld [vmem:[#allocation6 + $0x80] ss:$12 sps:$4 sm:$0xff]  }
  0x5e   :  { %296 = vmatpush1.bf16.msra.mxu1 %v2459_v26  ;;  %v2966_v22 = vsub.s32 1, %v2963_v21  ;;  %v2972_v24 = vsub.s32 0, %v2963_v21 }
  0x5f   :  { %775 = vmatprep.subr.bf16.mxu1 %v2478_v27  ;;  %745 = vmatpush1.bf16.msra.mxu0 %v2491_v36 }
  0x60   :  { %746 = vmatprep.subr.bf16.mxu0 %v2492_v37  ;;  %v136_v26 = vrot.slane %v127_v23, %v2966_v22  ;;  %v132_v27 = vrot.slane %v127_v23, %v2972_v24 }
  0x61   :  { %2145 = vmatmul.mubr.msk.bf16.vlgmr.msra.gmra.mxu1 %vm234_vm0, %v2449_v13  ;;  %v2549_v13 = vld [vmem:[#allocation4 + $0x1a0] ss:$8 sps:$4 sm:$0xff]  }
  0x62   :  { %776 = vmatpush1.bf16.msra.mxu1 %v2476_v30 }
  0x63   :  { %777 = vmatprep.subr.bf16.mxu1 %v2484_v31  ;;  %747 = vmatpush1.bf16.msra.mxu0 %v2497_v40  ;;  %v2558_v40 = vld [vmem:[#allocation6 + $0xa8] ss:$12 sps:$4 sm:$0xff]  }
  0x64   :  { %748 = vmatprep.subr.bf16.mxu0 %v2498_v42  ;;  %v2563_v42 = vld [vmem:[#allocation6 + $0x94] ss:$12 sps:$4 sm:$0xff]  }
  0x66   :  { %778 = vmatpush1.bf16.msra.mxu1 %v2482_v34 }
  0x67   :  { %779 = vmatprep.subr.bf16.mxu1 %v2490_v35  ;;  %749 = vmatpush2.bf16.msra.mxu0 %v2503_v44  ;;  %v2978_v44 = vsub.s32 2, %v2963_v21 }
  0x68   :  { %750 = vmatprep.subr.bf16.mxu0 %v2504_v45  ;;  %v2561_v45 = vld [vmem:[#allocation6 + $0x90] ss:$12 sps:$4 sm:$0xff]  }
  0x6a   :  { %780 = vmatpush1.bf16.msra.mxu1 %v2488_v38 }
  0x6b   :  { %781 = vmatprep.subr.bf16.mxu1 %v2496_v39  ;;  %751 = vmatpush2.bf16.msra.mxu0 %v2509_v48 }
  0x6c   :  { %752 = vmatprep.subr.bf16.mxu0 %v2510_v49  ;;  %v140_v49 = vrot.slane %v127_v23, %v2978_v44 }
  0x6e   :  { %782 = vmatpush1.bf16.msra.mxu1 %v2494_v41 }
  0x6f   :  { %783 = vmatprep.subr.bf16.mxu1 %v2502_v43  ;;  %753 = vmatpush2.bf16.msra.mxu0 %v2515_v52  ;;  %v143_v43 = vsub.s32 3, %v2963_v21 }
  0x70   :  { %754 = vmatprep.subr.bf16.mxu0 %v2516_v53  ;;  %v2569_v53 = vld [vmem:[#allocation6 + $0x64] ss:$12 sps:$4 sm:$0xff]  }
  0x71   :  { %v144_v48 = vrot.slane %v127_v23, %v143_v43  ;;  %v2597_v23 = vld [vmem:[#allocation6 + $0x120] ss:$12 sps:$4 sm:$0xff]  }
  0x72   :  { %784 = vmatpush1.bf16.msra.mxu1 %v2500_v46 }
  0x73   :  { %785 = vmatprep.subr.bf16.mxu1 %v2508_v47  ;;  %755 = vmatpush2.bf16.msra.mxu0 %v2521_v56  ;;  %v2566_v47 = vld [vmem:[#allocation6 + $0x7c] ss:$12 sps:$4 sm:$0xff]  }
  0x74   :  { %756 = vmatprep.subr.bf16.mxu0 %v2522_v57 }
  0x76   :  { %786 = vmatpush1.bf16.msra.mxu1 %v2506_v50 }
  0x77   :  { %787 = vmatprep.subr.bf16.mxu1 %v2514_v51  ;;  %757 = vmatpush2.bf16.msra.mxu0 %v2527_v60  ;;  %v2564_v51 = vld [vmem:[#allocation6 + $0x78] ss:$12 sps:$4 sm:$0xff]  }
  0x78   :  { %758 = vmatprep.subr.bf16.mxu0 %v2528_v62 }
  0x7a   :  { %788 = vmatpush1.bf16.msra.mxu1 %v2512_v54 }
  0x7b   :  { %789 = vmatprep.subr.bf16.mxu1 %v2520_v55  ;;  %759 = vmatpush2.bf16.msra.mxu0 %v2533_v1 }
  0x7c   :  { %760 = vmatprep.subr.bf16.mxu0 %v2534_v2  ;;  %v2570_v2 = vld [vmem:[#allocation6 + $0x48] ss:$12 sps:$4 sm:$0xff]  }
  0x7e   :  { %790 = vmatpush1.bf16.msra.mxu1 %v2518_v58 }
  0x7f   :  { %791 = vmatprep.subr.bf16.mxu1 %v2526_v59  ;;  %761 = vmatpush2.bf16.msra.mxu0 %v2539_v5  ;;  %v2567_v59 = vld [vmem:[#allocation6 + $0x60] ss:$12 sps:$4 sm:$0xff]  }
  0x80   :  { %762 = vmatprep.subr.bf16.mxu0 %v2540_v6  ;;  %v2575_v5 = vld [vmem:[#allocation6 + $0x34] ss:$12 sps:$4 sm:$0xff]   ;;  %v2573_v6 = vld [vmem:[#allocation6 + $0x30] ss:$12 sps:$4 sm:$0xff]  }
  0x82   :  { %792 = vmatpush2.bf16.msra.mxu1 %v2524_v61  ;;  %v2572_v61 = vld [vmem:[#allocation6 + $0x4c] ss:$12 sps:$4 sm:$0xff]  }
  0x83   :  { %793 = vmatprep.subr.bf16.mxu1 %v2532_v63  ;;  %763 = vmatpush2.bf16.msra.mxu0 %v2545_v9  ;;  %v2581_v9 = vld [vmem:[#allocation6 + $0x4] ss:$12 sps:$4 sm:$0xff]  }
  0x84   :  { %1161 = vmatprep.subr.bf16.mxu0 %v2560_v18  ;;  %v2595_v18 = vld [vmem:[#allocation6 + $0x140] ss:$12 sps:$4 sm:$0xff]  }
  0x86   :  { %794 = vmatpush2.bf16.msra.mxu1 %v2530_v0 }
  0x87   :  { %795 = vmatprep.subr.bf16.mxu1 %v2538_v3  ;;  %v2586_v3 = vld [vmem:[#allocation6 + $0xb0] ss:$12 sps:$4 sm:$0xff]  }
  0x8a   :  { %796 = vmatpush2.bf16.msra.mxu1 %v2536_v4 }
  0x8b   :  { %797 = vmatprep.subr.bf16.mxu1 %v2544_v7  ;;  %v2578_v7 = vld [vmem:[#allocation6 + $0x1c] ss:$12 sps:$4 sm:$0xff]  }
  0x8e   :  { %798 = vmatpush2.bf16.msra.mxu1 %v2542_v8  ;;  %v2576_v8 = vld [vmem:[#allocation6 + $0x18] ss:$12 sps:$4 sm:$0xff]  }
  0x8f   :  { %799 = vmatprep.subr.bf16.mxu1 %v2548_v10  ;;  %v2579_v10 = vld [vmem:[#allocation6] ss:$12 sps:$4 sm:$0xff]  }
  0x92   :  { %800 = vmatpush2.bf16.msra.mxu1 %v2546_v11  ;;  %v2584_v11 = vld [vmem:[#allocation6 + $0x16c] ss:$12 sps:$4 sm:$0xff]  }
  0x93   :  { %801 = vmatprep.subr.bf16.mxu1 %v2551_v12  ;;  %v2582_v12 = vld [vmem:[#allocation6 + $0x168] ss:$12 sps:$4 sm:$0xff]  }
  0x96   :  { %802 = vmatpush2.bf16.msra.mxu1 %v2549_v13  ;;  %v2589_v13 = vld [vmem:[#allocation6 + $0x154] ss:$12 sps:$4 sm:$0xff]  }
  0x97   :  { %803 = vmatprep.subr.bf16.mxu1 %v2554_v14  ;;  %v2590_v14 = vld [vmem:[#allocation6 + $0x158] ss:$12 sps:$4 sm:$0xff]  }
  0x9a   :  { %804 = vmatpush2.bf16.msra.mxu1 %v2552_v15  ;;  %v2587_v15 = vld [vmem:[#allocation6 + $0x150] ss:$12 sps:$4 sm:$0xff]  }
  0x9b   :  { %805 = vmatprep.subr.bf16.mxu1 %v2557_v16  ;;  %v2591_v16 = vld [vmem:[#allocation6 + $0x98] ss:$12 sps:$4 sm:$0xff]  }
  0x9e   :  { %806 = vmatpush2.bf16.msra.mxu1 %v2555_v17  ;;  %v2594_v17 = vld [vmem:[#allocation6 + $0x13c] ss:$12 sps:$4 sm:$0xff]  }
  0x9f   :  { %2357 = vmatprep.subr.bf16.mxu1 %v2585_v19  ;;  %v2592_v19 = vld [vmem:[#allocation6 + $0x138] ss:$12 sps:$4 sm:$0xff]  }
 0x111   :  { %v272_v25 = vpop.f32.mrf.mxu1 }
 0x112   :  { %v273_v32 = vadd.f32 %v272_v25, %v132_v27  ;;  %v2599_v25 = vld [vmem:[#allocation6 + $0x124] ss:$12 sps:$4 sm:$0xff]  }
 0x113   :  { %v274_v28 = vpop.f32.mrf.mxu1 }
 0x114   :  { %v275_v30 = vadd.f32 %v274_v28, %v136_v26  ;;  %v324_v38 = vmax.f32 %v273_v32, 0.0  ;;  %v2604_v28 = vld [vmem:[#allocation6 + $0x10c] ss:$12 sps:$4 sm:$0xff]   ;;  %v2609_v32 = vld [vmem:[#allocation6 + $0xf4] ss:$12 sps:$4 sm:$0xff]  }
 0x115   :  { %v276_v29 = vpop.f32.mrf.mxu1 }
 0x116   :  { %v277_v31 = vadd.f32 %v276_v29, %v132_v27  ;;  %v325_v36 = vmax.f32 %v275_v30, 0.0  ;;  %v2601_v27 = vld [vmem:[#allocation6 + $0x68] ss:$12 sps:$4 sm:$0xff]   ;;  %v2605_v29 = vld [vmem:[#allocation6 + $0x110] ss:$12 sps:$4 sm:$0xff]  }
 0x117   :  { %v278_v33 = vpop.f32.mrf.mxu1  ;;  %v2602_v30 = vld [vmem:[#allocation6 + $0x108] ss:$12 sps:$4 sm:$0xff]  }
 0x118   :  { %v279_v34 = vadd.f32 %v278_v33, %v136_v26  ;;  %v328_v35 = vmax.f32 %v277_v31, 0.0  ;;  %v2600_v26 = vld [vmem:[#allocation6 + $0x128] ss:$12 sps:$4 sm:$0xff]   ;;  %v2606_v31 = vld [vmem:[#allocation6 + $0x50] ss:$12 sps:$4 sm:$0xff]  }
 0x119   :  { %v2610_v33 = vld [vmem:[#allocation6 + $0xf8] ss:$12 sps:$4 sm:$0xff]  }
 0x11a   :  { %v329_v37 = vmax.f32 %v279_v34, 0.0  ;;  %v332_v41 = vpack.c.bf16 %v328_v35, %v324_v38  ;;  %v2607_v34 = vld [vmem:[#allocation6 + $0xf0] ss:$12 sps:$4 sm:$0xff]   ;;  %v2611_v35 = vld [vmem:[#allocation6 + $0x38] ss:$12 sps:$4 sm:$0xff]  }
 0x11b   :  { %v2612_v38 = vld [vmem:[#allocation6 + $0xd8] ss:$12 sps:$4 sm:$0xff]  }
 0x11c   :  { %v333_v39 = vpack.c.bf16 %v329_v37, %v325_v36  ;;  %v2614_v36 = vld [vmem:[#allocation6 + $0xdc] ss:$12 sps:$4 sm:$0xff]   ;;  %v2615_v37 = vld [vmem:[#allocation6 + $0xe0] ss:$12 sps:$4 sm:$0xff]  }
 0x11e   :  { %764 = vmatprep.mubr.bf16.mxu0 %v333_v39  ;;  %v2616_v39 = vld [vmem:[#allocation6 + $0x20] ss:$12 sps:$4 sm:$0xff]  }
 0x11f   :  { %765 = vmatmul.mubr.bf16.vlgmr.msra.gmra.mxu0 %v332_v41  ;;  %v2620_v41 = vld [vmem:[#allocation6 + $0xc8] ss:$12 sps:$4 sm:$0xff]  }
 0x120   :  { %1162 = vmatpush1.bf16.msra.mxu0 %v2558_v40  ;;  %v2619_v40 = vld [vmem:[#allocation6 + $0xc4] ss:$12 sps:$4 sm:$0xff]  }
 0x121   :  { %v315_v46 = vpop.f32.mrf.mxu1  ;;  %1163 = vmatprep.subr.bf16.mxu0 %v2563_v42  ;;  %v2617_v42 = vld [vmem:[#allocation6 + $0xc0] ss:$12 sps:$4 sm:$0xff]  }
 0x122   :  { %v316_v56 = vadd.f32 %v315_v46, %v140_v49  ;;  %v2624_v46 = vld [vmem:[#allocation7 + $0xe4] ss:$16 sps:$4 sm:$0xff]  }
 0x123   :  { %v317_v50 = vpop.f32.mrf.mxu1 }
 0x124   :  { %1164 = vmatpush1.bf16.msra.mxu0 %v2561_v45  ;;  %v318_v54 = vadd.f32 %v317_v50, %v144_v48  ;;  %v326_v0 = vmax.f32 %v316_v56, 0.0  ;;  %v2621_v45 = vld [vmem:[#allocation6 + $0x8] ss:$12 sps:$4 sm:$0xff]   ;;  %v400_v50 = vld [vmem:[%s3021_s4] sm:$0x3] }
 0x125   :  { %v319_v52 = vpop.f32.mrf.mxu1  ;;  %1165 = vmatprep.subr.bf16.mxu0 %v2566_v47  ;;  %v2627_v47 = vld [vmem:[#allocation7 + $0xec] ss:$16 sps:$4 sm:$0xff]  }
 0x126   :  { %v320_v55 = vadd.f32 %v319_v52, %v140_v49  ;;  %v327_v62 = vmax.f32 %v318_v54, 0.0  ;;  %v409_v52 = vrot.slane %v400_v50, %v2966_v22 }
 0x127   :  { %v321_v57 = vpop.f32.mrf.mxu1 }
 0x128   :  { %v322_v58 = vadd.f32 %v321_v57, %v144_v48  ;;  %1166 = vmatpush1.bf16.msra.mxu0 %v2564_v51  ;;  %v330_v60 = vmax.f32 %v320_v55, 0.0 }
 0x129   :  { %1167 = vmatprep.subr.bf16.mxu0 %v2569_v53  ;;  %v405_v53 = vrot.slane %v400_v50, %v2972_v24  ;;  %v2676_v50 = vld [vmem:[#allocation7 + $0x1c0] ss:$16 sps:$4 sm:$0xff]  }
 0x12a   :  { %v331_v63 = vmax.f32 %v322_v58, 0.0  ;;  %v334_v4 = vpack.c.bf16 %v330_v60, %v326_v0 }
 0x12c   :  { %v335_v1 = vpack.c.bf16 %v331_v63, %v327_v62  ;;  %1168 = vmatpush1.bf16.msra.mxu0 %v2567_v59 }
 0x12d   :  { %1169 = vmatprep.subr.bf16.mxu0 %v2572_v61 }
 0x12e   :  { %807 = vmatprep.mubr.bf16.mxu1 %v335_v1 }
 0x12f   :  { %808 = vmatmul.mubr.bf16.vlgmr.msra.gmra.mxu1 %v334_v4 }
 0x130   :  { %1170 = vmatpush1.bf16.msra.mxu0 %v2570_v2  ;;  %2358 = vmatpush3.bf16.msra.mxu1 %v2586_v3 }
 0x131   :  { %1171 = vmatprep.subr.bf16.mxu0 %v2575_v5  ;;  %2359 = vmatprep.subr.bf16.mxu1 %v2590_v14  ;;  %v2631_v14 = vld [vmem:[#allocation7 + $0xc8] ss:$16 sps:$4 sm:$0xff]  }
 0x134   :  { %1172 = vmatpush1.bf16.msra.mxu0 %v2573_v6  ;;  %2360 = vmatpush3.bf16.msra.mxu1 %v2591_v16  ;;  %v2639_v16 = vld [vmem:[#allocation7 + $0xac] ss:$16 sps:$4 sm:$0xff]  }
 0x135   :  { %1173 = vmatprep.subr.bf16.mxu0 %v2578_v7  ;;  %2361 = vmatprep.subr.bf16.mxu1 %v2595_v18  ;;  %v2637_v18 = vld [vmem:[#allocation7 + $0xa8] ss:$16 sps:$4 sm:$0xff]  }
 0x138   :  { %1174 = vmatpush1.bf16.msra.mxu0 %v2576_v8  ;;  %2362 = vmatpush3.bf16.msra.mxu1 %v2596_v20  ;;  %v2622_v8 = vld [vmem:[#allocation7 + $0xe0] ss:$16 sps:$4 sm:$0xff]   ;;  %v2645_v20 = vld [vmem:[#allocation7 + $0x8c] ss:$16 sps:$4 sm:$0xff]  }
 0x139   :  { %1175 = vmatprep.subr.bf16.mxu0 %v2581_v9  ;;  %2363 = vmatprep.subr.bf16.mxu1 %v2600_v26  ;;  %v2625_v9 = vld [vmem:[#allocation7 + $0xe8] ss:$16 sps:$4 sm:$0xff]   ;;  %v2648_v26 = vld [vmem:[#allocation7 + $0x64] ss:$16 sps:$4 sm:$0xff]  }
 0x13c   :  { %1176 = vmatpush1.bf16.msra.mxu0 %v2579_v10  ;;  %2364 = vmatpush3.bf16.msra.mxu1 %v2601_v27  ;;  %v2651_v27 = vld [vmem:[#allocation7 + $0x6c] ss:$16 sps:$4 sm:$0xff]  }
 0x13d   :  { %1177 = vmatprep.subr.bf16.mxu0 %v2584_v11  ;;  %2365 = vmatprep.subr.bf16.mxu1 %v2605_v29  ;;  %v2630_v11 = vld [vmem:[#allocation7 + $0xc4] ss:$16 sps:$4 sm:$0xff]   ;;  %v2649_v29 = vld [vmem:[#allocation7 + $0x68] ss:$16 sps:$4 sm:$0xff]  }
 0x140   :  { %1178 = vmatpush2.bf16.msra.mxu0 %v2582_v12  ;;  %2366 = vmatpush3.bf16.msra.mxu1 %v2606_v31  ;;  %v2633_v12 = vld [vmem:[#allocation7 + $0xcc] ss:$16 sps:$4 sm:$0xff]  }
 0x141   :  { %1179 = vmatprep.subr.bf16.mxu0 %v2589_v13  ;;  %2367 = vmatprep.subr.bf16.mxu1 %v2610_v33  ;;  %v2628_v13 = vld [vmem:[#allocation7 + $0xc0] ss:$16 sps:$4 sm:$0xff]   ;;  %v2657_v31 = vld [vmem:[#allocation7 + $0x4c] ss:$16 sps:$4 sm:$0xff]   ;;  %v2655_v33 = vld [vmem:[#allocation7 + $0x48] ss:$16 sps:$4 sm:$0xff]  }
 0x144   :  { %1180 = vmatpush2.bf16.msra.mxu0 %v2587_v15  ;;  %2368 = vmatpush3.bf16.msra.mxu1 %v2611_v35  ;;  %v2636_v15 = vld [vmem:[#allocation7 + $0xa4] ss:$16 sps:$4 sm:$0xff]   ;;  %v2663_v35 = vld [vmem:[#allocation7 + $0x2c] ss:$16 sps:$4 sm:$0xff]  }
 0x145   :  { %1181 = vmatprep.subr.bf16.mxu0 %v2594_v17  ;;  %2369 = vmatprep.subr.bf16.mxu1 %v2615_v37  ;;  %v2634_v17 = vld [vmem:[#allocation7 + $0xa0] ss:$16 sps:$4 sm:$0xff]   ;;  %v2661_v37 = vld [vmem:[#allocation7 + $0x28] ss:$16 sps:$4 sm:$0xff]  }
 0x148   :  { %1182 = vmatpush2.bf16.msra.mxu0 %v2592_v19  ;;  %2370 = vmatpush3.bf16.msra.mxu1 %v2616_v39  ;;  %v2642_v19 = vld [vmem:[#allocation7 + $0x84] ss:$16 sps:$4 sm:$0xff]   ;;  %v2669_v39 = vld [vmem:[#allocation7 + $0xc] ss:$16 sps:$4 sm:$0xff]  }
 0x149   :  { %1183 = vmatprep.subr.bf16.mxu0 %v2599_v25  ;;  %2371 = vmatprep.subr.bf16.mxu1 %v2620_v41  ;;  %v2643_v25 = vld [vmem:[#allocation7 + $0x88] ss:$16 sps:$4 sm:$0xff]  }
 0x14a   :  { %v2667_v41 = vld [vmem:[#allocation7 + $0x8] ss:$16 sps:$4 sm:$0xff]  }
 0x14c   :  { %1184 = vmatpush2.bf16.msra.mxu0 %v2597_v23  ;;  %2372 = vmatpush3.bf16.msra.mxu1 %v2621_v45  ;;  %v2640_v23 = vld [vmem:[#allocation7 + $0x80] ss:$16 sps:$4 sm:$0xff]   ;;  %v2675_v45 = vld [vmem:[#allocation7 + $0x1ec] ss:$16 sps:$4 sm:$0xff]  }
 0x14d   :  { %1185 = vmatprep.subr.bf16.mxu0 %v2604_v28  ;;  %1659 = vmatprep.subr.bf16.mxu1 %v2624_v46  ;;  %v2646_v28 = vld [vmem:[#allocation7 + $0x60] ss:$16 sps:$4 sm:$0xff]  }
 0x14e   :  { %v2670_v46 = vld [vmem:[#allocation7 + $0x1e0] ss:$16 sps:$4 sm:$0xff]  }
 0x150   :  { %1186 = vmatpush2.bf16.msra.mxu0 %v2602_v30  ;;  %v2654_v30 = vld [vmem:[#allocation7 + $0x44] ss:$16 sps:$4 sm:$0xff]  }
 0x151   :  { %1187 = vmatprep.subr.bf16.mxu0 %v2609_v32  ;;  %v2652_v32 = vld [vmem:[#allocation7 + $0x40] ss:$16 sps:$4 sm:$0xff]  }
 0x154   :  { %1188 = vmatpush2.bf16.msra.mxu0 %v2607_v34  ;;  %v2660_v34 = vld [vmem:[#allocation7 + $0x24] ss:$16 sps:$4 sm:$0xff]  }
 0x155   :  { %1189 = vmatprep.subr.bf16.mxu0 %v2614_v36  ;;  %v2658_v36 = vld [vmem:[#allocation7 + $0x20] ss:$16 sps:$4 sm:$0xff]  }
 0x158   :  { %1190 = vmatpush2.bf16.msra.mxu0 %v2612_v38  ;;  %v2666_v38 = vld [vmem:[#allocation7 + $0x4] ss:$16 sps:$4 sm:$0xff]  }
 0x159   :  { %1191 = vmatprep.subr.bf16.mxu0 %v2619_v40  ;;  %v2664_v40 = vld [vmem:[#allocation7] ss:$16 sps:$4 sm:$0xff]  }
 0x15c   :  { %1192 = vmatpush2.bf16.msra.mxu0 %v2617_v42  ;;  %v2672_v42 = vld [vmem:[#allocation7 + $0x1e4] ss:$16 sps:$4 sm:$0xff]  }
 0x15d   :  { %1702 = vmatprep.subr.bf16.mxu0 %v2627_v47  ;;  %v2673_v47 = vld [vmem:[#allocation7 + $0x1e8] ss:$16 sps:$4 sm:$0xff]  }
 0x1df   :  { %v766_v48 = vpop.f32.mrf.mxu0 }
 0x1e0   :  { %v767_v59 = vadd.f32 %v766_v48, %v405_v53  ;;  %v2678_v48 = vld [vmem:[#allocation7 + $0x1c4] ss:$16 sps:$4 sm:$0xff]  }
 0x1e1   :  { %v768_v49 = vpop.f32.mrf.mxu0 }
 0x1e2   :  { %v769_v57 = vadd.f32 %v768_v49, %v409_v52  ;;  %v2681_v49 = vld [vmem:[#allocation7 + $0x1cc] ss:$16 sps:$4 sm:$0xff]  }
 0x1e3   :  { %v770_v51 = vpop.f32.mrf.mxu0 }
 0x1e4   :  { %v771_v58 = vadd.f32 %v770_v51, %v405_v53  ;;  %v2679_v51 = vld [vmem:[#allocation7 + $0x1c8] ss:$16 sps:$4 sm:$0xff]   ;;  %v2687_v53 = vld [vmem:[#allocation7 + $0x1ac] ss:$16 sps:$4 sm:$0xff]  }
 0x1e5   :  { %v772_v55 = vpop.f32.mrf.mxu0 }
 0x1e6   :  { %v773_v61 = vadd.f32 %v772_v55, %v409_v52  ;;  %v2684_v52 = vld [vmem:[#allocation7 + $0x1a4] ss:$16 sps:$4 sm:$0xff]   ;;  %v2685_v55 = vld [vmem:[#allocation7 + $0x1a8] ss:$16 sps:$4 sm:$0xff]  }
 0x1ef   :  { %v809_v54 = vpop.f32.mrf.mxu1 }
 0x1f0   :  { %v810_v0 = vadd.f32 %v809_v54, %v767_v59  ;;  %v2682_v54 = vld [vmem:[#allocation7 + $0x1a0] ss:$16 sps:$4 sm:$0xff]   ;;  %v2691_v59 = vld [vmem:[#allocation7 + $0x188] ss:$16 sps:$4 sm:$0xff]  }
 0x1f1   :  { %v811_v56 = vpop.f32.mrf.mxu1 }
 0x1f2   :  { %v812_v62 = vadd.f32 %v811_v56, %v769_v57  ;;  %v818_v6 = vmax.f32 %v810_v0, 0.0  ;;  %v2690_v56 = vld [vmem:[#allocation7 + $0x184] ss:$16 sps:$4 sm:$0xff]   ;;  %v2693_v57 = vld [vmem:[#allocation7 + $0x18c] ss:$16 sps:$4 sm:$0xff]  }
 0x1f3   :  { %v813_v60 = vpop.f32.mrf.mxu1  ;;  %v2702_v0 = vld [vmem:[#allocation7 + $0x144] ss:$16 sps:$4 sm:$0xff]  }
 0x1f4   :  { %v814_v63 = vadd.f32 %v813_v60, %v771_v58  ;;  %v819_v4 = vmax.f32 %v812_v62, 0.0  ;;  %v2688_v58 = vld [vmem:[#allocation7 + $0x180] ss:$16 sps:$4 sm:$0xff]   ;;  %v2696_v60 = vld [vmem:[#allocation7 + $0x164] ss:$16 sps:$4 sm:$0xff]  }
 0x1f5   :  { %v815_v1 = vpop.f32.mrf.mxu1  ;;  %v2694_v62 = vld [vmem:[#allocation7 + $0x160] ss:$16 sps:$4 sm:$0xff]  }
 0x1f6   :  { %v816_v2 = vadd.f32 %v815_v1, %v773_v61  ;;  %v820_v3 = vmax.f32 %v814_v63, 0.0  ;;  %v2699_v61 = vld [vmem:[#allocation7 + $0x16c] ss:$16 sps:$4 sm:$0xff]   ;;  %v2697_v63 = vld [vmem:[#allocation7 + $0x168] ss:$16 sps:$4 sm:$0xff]  }
 0x1f7   :  { %v2705_v1 = vld [vmem:[#allocation7 + $0x14c] ss:$16 sps:$4 sm:$0xff]  }
 0x1f8   :  { %v821_v5 = vmax.f32 %v816_v2, 0.0  ;;  %v822_v10 = vpack.c.bf16 %v820_v3, %v818_v6  ;;  %v2700_v2 = vld [vmem:[#allocation7 + $0x140] ss:$16 sps:$4 sm:$0xff]   ;;  %v2703_v3 = vld [vmem:[#allocation7 + $0x148] ss:$16 sps:$4 sm:$0xff]  }
 0x1f9   :  { %v2706_v6 = vld [vmem:[#allocation7 + $0x120] ss:$16 sps:$4 sm:$0xff]  }
 0x1fa   :  { %v823_v7 = vpack.c.bf16 %v821_v5, %v819_v4  ;;  %v2708_v4 = vld [vmem:[#allocation7 + $0x124] ss:$16 sps:$4 sm:$0xff]   ;;  %v2711_v5 = vld [vmem:[#allocation7 + $0x12c] ss:$16 sps:$4 sm:$0xff]  }
 0x1fc   :  { %1193 = vmatprep.mubr.bf16.mxu0 %v823_v7  ;;  %1236 = vmatprep.mubr.bf16.mxu1 %v823_v7  ;;  %v2709_v7 = vld [vmem:[#allocation7 + $0x128] ss:$16 sps:$4 sm:$0xff]  }
 0x1fd   :  { %1194 = vmatmul.mubr.bf16.vlgmr.msra.gmra.mxu0 %v822_v10  ;;  %1237 = vmatmul.mubr.bf16.vlgmr.msra.gmra.mxu1 %v822_v10  ;;  %v2712_v10 = vld [vmem:[#allocation7 + $0x100] ss:$16 sps:$4 sm:$0xff]  }
 0x1fe   :  { %1660 = vmatpush1.bf16.msra.mxu1 %v2622_v8  ;;  %1703 = vmatpush1.bf16.msra.mxu0 %v2625_v9  ;;  %v2714_v8 = vld [vmem:[#allocation7 + $0x104] ss:$16 sps:$4 sm:$0xff]   ;;  %v2717_v9 = vld [vmem:[#allocation7 + $0x10c] ss:$16 sps:$4 sm:$0xff]  }
 0x1ff   :  { %1661 = vmatprep.subr.bf16.mxu1 %v2630_v11  ;;  %1704 = vmatprep.subr.bf16.mxu0 %v2633_v12  ;;  %v2715_v11 = vld [vmem:[#allocation7 + $0x108] ss:$16 sps:$4 sm:$0xff]  }
 0x200   :  { %v2718_v12 = vld [vmem:[#allocation9 + $0x78] sm:$0xff]  }
 0x202   :  { %1662 = vmatpush1.bf16.msra.mxu1 %v2628_v13  ;;  %1705 = vmatpush1.bf16.msra.mxu0 %v2631_v14  ;;  %v2719_v13 = vld [vmem:[#allocation9 + $0xf8] sm:$0xff]   ;;  %v888_v14 = vld [vmem:[%s3023_s6] sm:$0x7] }
 0x203   :  { %1663 = vmatprep.subr.bf16.mxu1 %v2636_v15  ;;  %1706 = vmatprep.subr.bf16.mxu0 %v2639_v16  ;;  %v893_v15 = vrot.slane %v888_v14, %v2972_v24 }
 0x206   :  { %1664 = vmatpush1.bf16.msra.mxu1 %v2634_v17  ;;  %1707 = vmatpush1.bf16.msra.mxu0 %v2637_v18 }
 0x207   :  { %1665 = vmatprep.subr.bf16.mxu1 %v2642_v19  ;;  %1708 = vmatprep.subr.bf16.mxu0 %v2645_v20 }
 0x20a   :  { %1666 = vmatpush1.bf16.msra.mxu1 %v2640_v23  ;;  %1709 = vmatpush1.bf16.msra.mxu0 %v2643_v25  ;;  %v901_v23 = vrot.slane %v888_v14, %v2978_v44 }
 0x20b   :  { %1667 = vmatprep.subr.bf16.mxu1 %v2648_v26  ;;  %1710 = vmatprep.subr.bf16.mxu0 %v2651_v27  ;;  %v897_v26 = vrot.slane %v888_v14, %v2966_v22 }
 0x20e   :  { %1668 = vmatpush1.bf16.msra.mxu1 %v2646_v28  ;;  %1711 = vmatpush1.bf16.msra.mxu0 %v2649_v29 }
 0x20f   :  { %1669 = vmatprep.subr.bf16.mxu1 %v2654_v30  ;;  %1712 = vmatprep.subr.bf16.mxu0 %v2657_v31 }
 0x212   :  { %1670 = vmatpush1.bf16.msra.mxu1 %v2652_v32  ;;  %1713 = vmatpush1.bf16.msra.mxu0 %v2655_v33 }
 0x213   :  { %1671 = vmatprep.subr.bf16.mxu1 %v2660_v34  ;;  %1714 = vmatprep.subr.bf16.mxu0 %v2663_v35 }
 0x216   :  { %1672 = vmatpush1.bf16.msra.mxu1 %v2658_v36  ;;  %1715 = vmatpush1.bf16.msra.mxu0 %v2661_v37 }
 0x217   :  { %1673 = vmatprep.subr.bf16.mxu1 %v2666_v38  ;;  %1716 = vmatprep.subr.bf16.mxu0 %v2669_v39 }
 0x21a   :  { %1674 = vmatpush1.bf16.msra.mxu1 %v2664_v40  ;;  %1717 = vmatpush1.bf16.msra.mxu0 %v2667_v41 }
 0x21b   :  { %1675 = vmatprep.subr.bf16.mxu1 %v2672_v42  ;;  %1718 = vmatprep.subr.bf16.mxu0 %v2675_v45  ;;  %v2720_v42 = vld [vmem:[#allocation9 + $0x38] sm:$0xff]  }
 0x21c   :  { %v2721_v45 = vld [vmem:[#allocation9 + $0xb8] sm:$0xff]  }
 0x21e   :  { %1676 = vmatpush2.bf16.msra.mxu1 %v2670_v46  ;;  %1719 = vmatpush2.bf16.msra.mxu0 %v2673_v47  ;;  %v2722_v47 = vld [vmem:[#allocation9 + $0x70] sm:$0xff]  }
 0x21f   :  { %1677 = vmatprep.subr.bf16.mxu1 %v2678_v48  ;;  %1720 = vmatprep.subr.bf16.mxu0 %v2681_v49  ;;  %v2723_v48 = vld [vmem:[#allocation9 + $0xf0] sm:$0xff]  }
 0x220   :  { %v2724_v49 = vld [vmem:[#allocation9 + $0x30] sm:$0xff]  }
 0x222   :  { %1678 = vmatpush2.bf16.msra.mxu1 %v2676_v50  ;;  %1721 = vmatpush2.bf16.msra.mxu0 %v2679_v51  ;;  %v2725_v50 = vld [vmem:[#allocation9 + $0xb0] sm:$0xff]   ;;  %v2726_v51 = vld [vmem:[#allocation9 + $0x68] sm:$0xff]  }
 0x223   :  { %1679 = vmatprep.subr.bf16.mxu1 %v2684_v52  ;;  %1722 = vmatprep.subr.bf16.mxu0 %v2687_v53  ;;  %v2727_v52 = vld [vmem:[#allocation9 + $0xe8] sm:$0xff]  }
 0x224   :  { %v2728_v53 = vld [vmem:[#allocation9 + $0x28] sm:$0xff]  }
 0x226   :  { %1680 = vmatpush2.bf16.msra.mxu1 %v2682_v54  ;;  %1723 = vmatpush2.bf16.msra.mxu0 %v2685_v55  ;;  %v2729_v54 = vld [vmem:[#allocation9 + $0xa8] sm:$0xff]   ;;  %v2730_v55 = vld [vmem:[#allocation9 + $0x60] sm:$0xff]  }
 0x227   :  { %1681 = vmatprep.subr.bf16.mxu1 %v2690_v56  ;;  %1724 = vmatprep.subr.bf16.mxu0 %v2693_v57  ;;  %v2731_v56 = vld [vmem:[#allocation9 + $0xe0] sm:$0xff]  }
 0x228   :  { %v2732_v57 = vld [vmem:[#allocation9 + $0x20] sm:$0xff]  }
 0x22a   :  { %1682 = vmatpush2.bf16.msra.mxu1 %v2688_v58  ;;  %1725 = vmatpush2.bf16.msra.mxu0 %v2691_v59  ;;  %v2733_v58 = vld [vmem:[#allocation9 + $0xa0] sm:$0xff]   ;;  %v2734_v59 = vld [vmem:[#allocation9 + $0x58] sm:$0xff]  }
 0x22b   :  { %1683 = vmatprep.subr.bf16.mxu1 %v2696_v60  ;;  %1726 = vmatprep.subr.bf16.mxu0 %v2699_v61  ;;  %v2735_v60 = vld [vmem:[#allocation9 + $0xd8] sm:$0xff]  }
 0x22c   :  { %v2736_v61 = vld [vmem:[#allocation9 + $0x18] sm:$0xff]  }
 0x22e   :  { %1684 = vmatpush2.bf16.msra.mxu1 %v2694_v62  ;;  %1727 = vmatpush2.bf16.msra.mxu0 %v2697_v63  ;;  %v2737_v62 = vld [vmem:[#allocation9 + $0x98] sm:$0xff]   ;;  %v2738_v63 = vld [vmem:[#allocation9 + $0x50] sm:$0xff]  }
 0x22f   :  { %1685 = vmatprep.subr.bf16.mxu1 %v2702_v0  ;;  %1728 = vmatprep.subr.bf16.mxu0 %v2705_v1  ;;  %v2739_v0 = vld [vmem:[#allocation9 + $0xd0] sm:$0xff]  }
 0x230   :  { %v2740_v1 = vld [vmem:[#allocation9 + $0x10] sm:$0xff]  }
 0x232   :  { %1686 = vmatpush2.bf16.msra.mxu1 %v2700_v2  ;;  %1729 = vmatpush2.bf16.msra.mxu0 %v2703_v3  ;;  %v2741_v2 = vld [vmem:[#allocation9 + $0x90] sm:$0xff]   ;;  %v2742_v3 = vld [vmem:[#allocation9 + $0x48] sm:$0xff]  }
 0x233   :  { %1687 = vmatprep.subr.bf16.mxu1 %v2708_v4  ;;  %1730 = vmatprep.subr.bf16.mxu0 %v2711_v5  ;;  %v2743_v4 = vld [vmem:[#allocation9 + $0xc8] sm:$0xff]  }
 0x234   :  { %v2744_v5 = vld [vmem:[#allocation9 + $0x8] sm:$0xff]  }
 0x236   :  { %1688 = vmatpush2.bf16.msra.mxu1 %v2706_v6  ;;  %1731 = vmatpush2.bf16.msra.mxu0 %v2709_v7  ;;  %v2745_v6 = vld [vmem:[#allocation9 + $0x88] sm:$0xff]   ;;  %v2746_v7 = vld [vmem:[#allocation9 + $0x40] sm:$0xff]  }
 0x237   :  { %1689 = vmatprep.subr.bf16.mxu1 %v2714_v8  ;;  %1732 = vmatprep.subr.bf16.mxu0 %v2717_v9  ;;  %v2747_v8 = vld [vmem:[#allocation9 + $0xc0] sm:$0xff]  }
 0x238   :  { %v2748_v9 = vld [vmem:[#allocation9] sm:$0xff]  }
 0x23a   :  { %1690 = vmatpush2.bf16.msra.mxu1 %v2712_v10  ;;  %1733 = vmatpush2.bf16.msra.mxu0 %v2715_v11  ;;  %v2749_v10 = vld [vmem:[#allocation9 + $0x80] sm:$0xff]  }
 0x23b   :  { %2379 = vmatprep.subr.bf16.mxu1 %v2718_v12  ;;  %2401 = vmatprep.subr.bf16.mxu0 %v2719_v13  ;;  %v1317_v11 = vld [vmem:[%s3025_s8] sm:$0xf] }
 0x23c   :  { %v1326_v14 = vrot.slane %v1317_v11, %v2966_v22 }
 0x2bd   :  { %v1195_v16 = vpop.f32.mrf.mxu0  ;;  %v2373_v17 = vpop.f32.mrf.mxu1 }
 0x2be   :  { %v1196_v18 = vadd.f32 %v1195_v16, %v893_v15  ;;  %v1322_v16 = vrot.slane %v1317_v11, %v2972_v24 }
 0x2bf   :  { %v1197_v19 = vpop.f32.mrf.mxu0  ;;  %v2374_v20 = vpop.f32.mrf.mxu1 }
 0x2c0   :  { %1245 = vst [vmem:[%s3029_s12] sm:$0xff] %v1196_v18  ;;  %v2375_v25 = vadd.f32 %v2374_v20, %v2373_v17  ;;  %v1198_v35 = vadd.f32 %v1197_v19, %v897_v26  ;;  %v1330_v17 = vrot.slane %v1317_v11, %v2978_v44 }
 0x2c1   :  { %v1199_v27 = vpop.f32.mrf.mxu0  ;;  %v2376_v28 = vpop.f32.mrf.mxu1 }
 0x2c2   :  { %v1200_v29 = vadd.f32 %v1199_v27, %v893_v15  ;;  %v1239_v32 = vadd.f32 %v2375_v25, %v901_v23  ;;  %v1247_v40 = vmax.f32 %v1198_v35, 0.0  ;;  %v1334_v15 = vrot.slane %v1317_v11, %v143_v43 }
 0x2c3   :  { %v1201_v30 = vpop.f32.mrf.mxu0  ;;  %v2377_v31 = vpop.f32.mrf.mxu1 }
 0x2c4   :  { %1246 = vst [vmem:[%s3029_s12 + $0x8] sm:$0xff] %v1200_v29  ;;  %v1202_v33 = vadd.f32 %v1201_v30, %v897_v26  ;;  %v2378_v34 = vadd.f32 %v2377_v31, %v2376_v28  ;;  %v1248_v38 = vmax.f32 %v1239_v32, 0.0 }
 0x2c6   :  { %v1242_v36 = vadd.f32 %v2378_v34, %v901_v23  ;;  %v1249_v37 = vmax.f32 %v1202_v33, 0.0 }
 0x2c8   :  { %v1250_v39 = vmax.f32 %v1242_v36, 0.0  ;;  %v1251_v46 = vpack.c.bf16 %v1249_v37, %v1247_v40 }
 0x2ca   :  { %v1252_v41 = vpack.c.bf16 %v1250_v39, %v1248_v38 }
 0x2cc   :  { %1691 = vmatprep.mubr.bf16.mxu1 %v1252_v41  ;;  %1734 = vmatprep.mubr.bf16.mxu0 %v1252_v41 }
 0x2cd   :  { %1692 = vmatmul.mubr.bf16.vlgmr.msra.gmra.mxu1 %v1251_v46  ;;  %1735 = vmatmul.mubr.bf16.vlgmr.msra.gmra.mxu0 %v1251_v46  ;;  %v2322_v46 = vld [vmem:[%s3027_s10] ss:$0 sm:$0xff] }
 0x2ce   :  { %2380 = vmatpush3.bf16.msra.mxu1 %v2720_v42  ;;  %2402 = vmatpush3.bf16.msra.mxu0 %v2721_v45 }
 0x2cf   :  { %2381 = vmatprep.subr.bf16.mxu1 %v2722_v47  ;;  %2403 = vmatprep.subr.bf16.mxu0 %v2723_v48 }
 0x2d2   :  { %2382 = vmatpush3.bf16.msra.mxu1 %v2724_v49  ;;  %2404 = vmatpush3.bf16.msra.mxu0 %v2725_v50 }
 0x2d3   :  { %2383 = vmatprep.subr.bf16.mxu1 %v2726_v51  ;;  %2405 = vmatprep.subr.bf16.mxu0 %v2727_v52 }
 0x2d6   :  { %2384 = vmatpush3.bf16.msra.mxu1 %v2728_v53  ;;  %2406 = vmatpush3.bf16.msra.mxu0 %v2729_v54 }
 0x2d7   :  { %2385 = vmatprep.subr.bf16.mxu1 %v2730_v55  ;;  %2407 = vmatprep.subr.bf16.mxu0 %v2731_v56 }
 0x2da   :  { %2386 = vmatpush3.bf16.msra.mxu1 %v2732_v57  ;;  %2408 = vmatpush3.bf16.msra.mxu0 %v2733_v58 }
 0x2db   :  { %2387 = vmatprep.subr.bf16.mxu1 %v2734_v59  ;;  %2409 = vmatprep.subr.bf16.mxu0 %v2735_v60 }
 0x2de   :  { %2388 = vmatpush3.bf16.msra.mxu1 %v2736_v61  ;;  %2410 = vmatpush3.bf16.msra.mxu0 %v2737_v62 }
 0x2df   :  { %2389 = vmatprep.subr.bf16.mxu1 %v2738_v63  ;;  %2411 = vmatprep.subr.bf16.mxu0 %v2739_v0 }
 0x2e2   :  { %2390 = vmatpush3.bf16.msra.mxu1 %v2740_v1  ;;  %2412 = vmatpush3.bf16.msra.mxu0 %v2741_v2 }
 0x2e3   :  { %2391 = vmatprep.subr.bf16.mxu1 %v2742_v3  ;;  %2413 = vmatprep.subr.bf16.mxu0 %v2743_v4 }
 0x2e6   :  { %2392 = vmatpush3.bf16.msra.mxu1 %v2744_v5  ;;  %2414 = vmatpush3.bf16.msra.mxu0 %v2745_v6 }
 0x2e7   :  { %2393 = vmatprep.subr.bf16.mxu1 %v2746_v7  ;;  %2415 = vmatprep.subr.bf16.mxu0 %v2747_v8 }
 0x2ea   :  { %2394 = vmatpush3.bf16.msra.mxu1 %v2748_v9  ;;  %2416 = vmatpush3.bf16.msra.mxu0 %v2749_v10 }
 0x38d   :  { %v1693_v12 = vpop.f32.mrf.mxu1  ;;  %v1736_v13 = vpop.f32.mrf.mxu0 }
 0x38e   :  { %v1694_v29 = vadd.f32 %v1693_v12, %v1322_v16  ;;  %v1737_v30 = vadd.f32 %v1736_v13, %v1330_v17 }
 0x38f   :  { %v1695_v18 = vpop.f32.mrf.mxu1  ;;  %v1738_v19 = vpop.f32.mrf.mxu0 }
 0x390   :  { %v1696_v25 = vadd.f32 %v1695_v18, %v1326_v14  ;;  %v1739_v26 = vadd.f32 %v1738_v19, %v1334_v15  ;;  %v1745_v36 = vmax.f32 %v1694_v29, 0.0  ;;  %v1747_v37 = vmax.f32 %v1737_v30, 0.0 }
 0x391   :  { %v1697_v20 = vpop.f32.mrf.mxu1  ;;  %v1740_v23 = vpop.f32.mrf.mxu0 }
 0x392   :  { %v1698_v27 = vadd.f32 %v1697_v20, %v1322_v16  ;;  %v1741_v28 = vadd.f32 %v1740_v23, %v1330_v17  ;;  %v1746_v34 = vmax.f32 %v1696_v25, 0.0  ;;  %v1748_v24 = vmax.f32 %v1739_v26, 0.0 }
 0x393   :  { %v1699_v31 = vpop.f32.mrf.mxu1  ;;  %v1742_v32 = vpop.f32.mrf.mxu0 }
 0x394   :  { %v1700_v22 = vadd.f32 %v1699_v31, %v1326_v14  ;;  %v1743_v33 = vadd.f32 %v1742_v32, %v1334_v15  ;;  %v1749_v21 = vmax.f32 %v1698_v27, 0.0  ;;  %v1751_v43 = vmax.f32 %v1741_v28, 0.0 }
 0x396   :  { %v1750_v35 = vmax.f32 %v1700_v22, 0.0  ;;  %v1752_v44 = vmax.f32 %v1743_v33, 0.0  ;;  %v1753_v40 = vpack.c.bf16 %v1749_v21, %v1745_v36  ;;  %v1755_v41 = vpack.c.bf16 %v1751_v43, %v1747_v37 }
 0x398   :  { %v1754_v38 = vpack.c.bf16 %v1750_v35, %v1746_v34  ;;  %v1756_v39 = vpack.c.bf16 %v1752_v44, %v1748_v24 }
 0x39a   :  { %2052 = vmatprep.mubr.bf16.mxu1 %v1754_v38  ;;  %2093 = vmatprep.mubr.bf16.mxu0 %v1756_v39 }
 0x39b   :  { %2053 = vmatmul.mubr.bf16.vlgmr.msra.gmra.mxu1 %v1753_v40  ;;  %2094 = vmatmul.mubr.bf16.vlgmr.msra.gmra.mxu0 %v1755_v41 }
 0x45b   :  { %v2395_v42 = vpop.f32.mrf.mxu1  ;;  %v2417_v45 = vpop.f32.mrf.mxu0 }
 0x45d   :  { %v2396_v47 = vpop.f32.mrf.mxu1  ;;  %v2418_v48 = vpop.f32.mrf.mxu0 }
 0x45e   :  { %v2397_v49 = vadd.f32 %v2396_v47, %v2395_v42  ;;  %v2419_v53 = vadd.f32 %v2418_v48, %v2417_v45 }
 0x45f   :  { %v2398_v50 = vpop.f32.mrf.mxu1  ;;  %v2420_v51 = vpop.f32.mrf.mxu0 }
 0x460   :  { %v2055_v52 = vadd.f32 %v2397_v49, %v2322_v46 }
 0x461   :  { %v2399_v54 = vpop.f32.mrf.mxu1  ;;  %v2421_v55 = vpop.f32.mrf.mxu0 }
 0x462   :  { %v2096_v56 = vadd.f32 %v2419_v53, %v2055_v52  ;;  %v2400_v57 = vadd.f32 %v2399_v54, %v2398_v50  ;;  %v2422_v60 = vadd.f32 %v2421_v55, %v2420_v51 }
 0x464   :  { %v2355_v58 = vmul.f32 -1.442695, %v2096_v56  ;;  %v2058_v59 = vadd.f32 %v2400_v57, %v2322_v46 }
 0x466   :  { %2750 = vpow2.f32 %v2355_v58  ;;  %v2099_v61 = vadd.f32 %v2422_v60, %v2058_v59 }
 0x468   :  { %v2356_v62 = vmul.f32 -1.442695, %v2099_v61 }
 0x46a   :  { %2752 = vpow2.f32 %v2356_v62 }
 0x473   :  { %v2751_v63 = vpop.eup %2750 }
 0x474   :  { %v2108_v0 = vadd.f32 1.0, %v2751_v63 }
 0x476   :  { %2754 = vrcp.f32 %v2108_v0 }
 0x477   :  { %v2753_v1 = vpop.eup %2752 }
 0x478   :  { %v2109_v2 = vadd.f32 1.0, %v2753_v1 }
 0x47a   :  { %2756 = vrcp.f32 %v2109_v2 }
 0x483   :  { %v2755_v3 = vpop.eup %2754 }
 0x484   :  { %2114 = vst [vmem:[%s3028_s11] sm:$0xff] %v2755_v3 }
 0x487   :  { %v2757_v4 = vpop.eup %2756 }
 0x488   :  { %2115 = vst [vmem:[%s3028_s11 + $0x8] sm:$0xff] %v2757_v4 }
 0x489   :  { %2124 = vsyncpa [#allocation3], 1 }
 0x48a   :  { %2125 = vsyncpa [#allocation5], 1 }
 0x48b   :  { %2126 = vsyncpa [#allocation8], 1 }

</bundles_post_ra>
